<compile_context>
chip_gen: v7x
topology: tpu7x:2x2x1
jax: 0.10.0
libtpu: 0.0.40
codegen_flags: <defaults>
</compile_context>

<pallas_src>
import math

import jax
import jax.numpy as jnp
from jax.experimental import pallas as pl
from jax.experimental.pallas import tpu as pltpu

PADH = 8  # zero-halo positions at each end of the pad scratch bands


def _make_resblock_kernel(TH, W, C_in, C_out, has_shortcut):
    n0 = TH * W            # output positions per band
    n1 = (TH + 2) * W      # conv1 output positions (band +- 1 row)
    n2 = (TH + 4) * W      # relu(bn1(x)) positions held in pad1 (band +- 2 rows)
    f32, bf16 = jnp.float32, jnp.bfloat16

    def kernel(x_ref,                  # (1, n0, C_in)       band of x, f32
               xt_ref, xb_ref,         # (1, 1, 2W, C_in)    2-row halos above/below
               s1_ref, b1_ref,         # (1, C_in)           folded bn1
               s2_ref, b2_ref,         # (1, C_out)          folded bn2 (+ conv1 bias)
               w1_ref, w2_ref,         # (9,C_in,C_out), (9,C_out,C_out)  bf16 taps
               *rest):
        if has_shortcut:
            wsc_ref, ssc_ref, bsc_ref, o_ref, pad1, pad2 = rest
        else:
            b2out_ref, o_ref, pad1, pad2 = rest

        b = pl.program_id(1)
        nb = pl.num_programs(1)
        s1, b1 = s1_ref[...], b1_ref[...]
        x = x_ref[0]                                        # (n0, C_in) f32

        # ---- pad1 = relu(bn1(x)) for band rows +-2, stored bf16, zero halos -----
        zpad_in = jnp.zeros((PADH, C_in), bf16)
        z2w = jnp.zeros((2 * W, C_in), bf16)
        pad1[0:PADH, :] = zpad_in
        pad1[PADH + n2:, :] = zpad_in
        pad1[PADH + 2 * W:PADH + 2 * W + n0, :] = (
            jnp.maximum(x * s1 + b1, 0.0).astype(bf16))
        pad1[PADH:PADH + 2 * W, :] = z2w
        pad1[PADH + 2 * W + n0:PADH + n2, :] = z2w

        @pl.when(b > 0)                  # rows r0-2, r0-1 exist (not image padding)
        def _():
            pad1[PADH:PADH + 2 * W, :] = jnp.maximum(
                xt_ref[0, 0] * s1 + b1, 0.0).astype(bf16)

        @pl.when(b < nb - 1)             # rows r0+TH, r0+TH+1 exist
        def _():
            pad1[PADH + 2 * W + n0:PADH + n2, :] = jnp.maximum(
                xb_ref[0, 0] * s1 + b1, 0.0).astype(bf16)

        # ---- horizontal image-edge masks (col 0 / W-1), shared by both convs ----
        col = jax.lax.broadcasted_iota(jnp.int32, (n1, 1), 0) % W
        mask_l = (col > 0).astype(f32)
        mask_r = (col < W - 1).astype(f32)

        def conv3x3(pad_ref, w_ref, n_pos, m_l, m_r):
            """3x3 conv as 9 shifted-slab matmuls (bf16 operands, f32 accum)."""
            # TODO(synk): if the bundle shows the +-1 sublane-shifted slices being
            #             materialized, build one pltpu.roll'ed copy per dj instead.
            base = PADH + W
            out = None
            for dj in (-1, 0, 1):
                acc = None
                for di in (-1, 0, 1):
                    t = (di + 1) * 3 + (dj + 1)
                    s = base + di * W + dj
                    d = jnp.dot(pad_ref[s:s + n_pos, :], w_ref[t],
                                preferred_element_type=f32)
                    acc = d if acc is None else acc + d
                if dj == -1:
                    acc = acc * m_l
                elif dj == 1:
                    acc = acc * m_r
                out = acc if out is None else out + acc
            return out

        # ---- conv1 -> bn2 (conv1 bias pre-folded) -> relu -> pad2 ----------------
        h1 = conv3x3(pad1, w1_ref, n1, mask_l, mask_r)          # (n1, C_out) f32
        a1 = jnp.maximum(h1 * s2_ref[...] + b2_ref[...], 0.0).astype(bf16)

        zpad_out = jnp.zeros((PADH, C_out), bf16)
        zrow = jnp.zeros((W, C_out), bf16)
        pad2[0:PADH, :] = zpad_out
        pad2[PADH + n1:, :] = zpad_out
        pad2[PADH:PADH + n1, :] = a1

        @pl.when(b == 0)                 # conv2 sees zero padding above the image
        def _():
            pad2[PADH:PADH + W, :] = zrow

        @pl.when(b == nb - 1)            # ... and below the image
        def _():
            pad2[PADH + n1 - W:PADH + n1, :] = zrow

        # ---- conv2 + shortcut -----------------------------------------------------
        h2 = conv3x3(pad2, w2_ref, n0, mask_l[:n0], mask_r[:n0])  # (n0, C_out) f32
        if has_shortcut:
            sc = jnp.dot(x.astype(bf16), wsc_ref[...], preferred_element_type=f32)
            out = h2 + sc * ssc_ref[...] + bsc_ref[...]           # conv2 bias folded
        else:   # Identity shortcut: out = conv2 + bias2 + x
            out = h2 + x + b2out_ref[...]
        o_ref[0] = out.astype(o_ref.dtype)

    return kernel


def _dense_tap_weights(w, groups, c_in, c_out):
    """Grouped (C_out, C_in//groups, 3, 3) conv weights -> dense (9, C_in, C_out).

    Group structure becomes block-diagonal so one matmul per tap covers all groups.
    TODO(synk): for C_per_group >= 128 switch to per-group matmuls (block-diagonal
                dense wastes groups x MACs and weight VMEM).
    """
    c_out_w, ipg, _, _ = w.shape
    opg = c_out_w // groups
    wt = w.astype(jnp.float32).reshape(groups, opg, ipg, 3, 3)
    wt = wt.transpose(3, 4, 0, 2, 1).reshape(9, groups, ipg, opg)  # (tap,g,cin_g,cout_g)
    dense = jnp.zeros((9, c_in, c_out), jnp.float32)
    for g in range(groups):
        dense = dense.at[:, g * ipg:(g + 1) * ipg, g * opg:(g + 1) * opg].set(wt[:, g])
    return dense


def _pick_band_rows(H, W, c_in, c_out, budget_bytes=8 << 20, max_positions=4096):
    """Largest row-band TH (divisor of H) whose per-band VMEM footprint fits."""
    cands = [t for t in range(2, H + 1)
             if H % t == 0 and ((t * W) % 8 == 0 or t == H)]
    if not cands:
        return H

    def footprint(t):
        n0, n1, n2 = t * W, (t + 2) * W, (t + 4) * W
        pads = (n2 + 2 * PADH) * c_in * 2 + (n1 + 2 * PADH) * c_out * 2   # bf16 pads
        io = 2 * (n0 * c_in + 4 * W * c_in + n0 * c_out) * 4              # 2x-buffered IO
        tmp = 8 * n1 * max(c_in, c_out) * 4                               # f32 temporaries
        return pads + io + tmp

    ok = [t for t in cands if footprint(t) <= budget_bytes and t * W <= max_positions]
    return max(ok) if ok else min(cands)


def resblock_pallas(x, p, groups1, groups2, band_rows=None):
    """Inference-mode ResBlock forward.  `p` holds folded-BN scale/shift (s*/b*),
    conv weights/biases and (optionally) the 1x1-conv shortcut parameters."""
    N, C_in, H, W = x.shape
    C_out = p["w1"].shape[0]
    has_shortcut = "wsc" in p
    assert C_in % groups1 == 0 and C_out % groups1 == 0 and C_out % groups2 == 0
    assert has_shortcut or C_in == C_out
    f32, bf16 = jnp.float32, jnp.bfloat16

    P = H * W
    TH = band_rows if band_rows is not None else _pick_band_rows(H, W, C_in, C_out)
    assert H % TH == 0 and (TH == H or (TH >= 2 and (TH * W) % 8 == 0)), (
        "band_rows must divide H and keep TH*W a multiple of 8")
    nb = H // TH
    n0, n1, n2 = TH * W, (TH + 2) * W, (TH + 4) * W

    # NCHW -> channels-last (lane-dense), kept at the true channel count.
    xt = jnp.transpose(x.astype(f32), (0, 2, 3, 1))               # (N, H, W, C_in)
    x_flat = xt.reshape(N, P, C_in)

    # 2-row halos above / below each band (zeros where outside the image).
    if TH >= 2:
        xpad = jnp.pad(xt, ((0, 0), (2, 2), (0, 0), (0, 0)))
        top = xpad[:, :H].reshape(N, nb, TH, W, C_in)[:, :, :2].reshape(N, nb, 2 * W, C_in)
        bot = xpad[:, 4:].reshape(N, nb, TH, W, C_in)[:, :, TH - 2:].reshape(N, nb, 2 * W, C_in)
    else:  # H == 1: halos are entirely image padding
        top = jnp.zeros((N, nb, 2 * W, C_in), f32)
        bot = jnp.zeros_like(top)

    row = lambda v: v.astype(f32).reshape(1, -1)
    s1, b1 = row(p["s1"]), row(p["b1"])
    s2 = row(p["s2"])
    b2 = row(p["s2"] * p["bias1"] + p["b2"])           # conv1 bias folded into bn2 shift
    w1 = _dense_tap_weights(p["w1"], groups1, C_in, C_out).astype(bf16)
    w2 = _dense_tap_weights(p["w2"], groups2, C_out, C_out).astype(bf16)
    if has_shortcut:
        wsc = p["wsc"][:, :, 0, 0].T.astype(bf16)                        # (C_in, C_out)
        extra = (wsc, row(p["ssc"]), row(p["bsc"] + p["bias2"]))         # conv2 bias folded
    else:
        extra = (row(p["bias2"]),)
    consts = (s1, b1, s2, b2, w1, w2) + extra

    def cspec(a):  # whole (small) array resident, same block every grid step
        zeros = (0,) * a.ndim
        return pl.BlockSpec(a.shape, lambda n, b: zeros)

    est = ((n2 + 2 * PADH) * C_in * 2 + (n1 + 2 * PADH) * C_out * 2
           + 2 * (n0 * C_in + 4 * W * C_in + n0 * C_out) * 4
           + 2 * sum(int(a.size) * a.dtype.itemsize for a in consts)
           + 8 * n1 * max(C_in, C_out) * 4)
    vmem_limit = int(min(48 << 20, max(24 << 20, 2 * est)))

    kernel = _make_resblock_kernel(TH, W, C_in, C_out, has_shortcut)

    # TODO(synk): at large channel counts, pipeline_mode=pl.Buffered(1) on the
    #             constant BlockSpecs would reclaim their double-buffer VMEM.
    out = pl.pallas_call(
        kernel,
        out_shape=jax.ShapeDtypeStruct((N, P, C_out), f32),
        grid=(N, nb),
        in_specs=[pl.BlockSpec((1, n0, C_in), lambda n, b: (n, b, 0)),
                  pl.BlockSpec((1, 1, 2 * W, C_in), lambda n, b: (n, b, 0, 0)),
                  pl.BlockSpec((1, 1, 2 * W, C_in), lambda n, b: (n, b, 0, 0))]
                 + [cspec(a) for a in consts],
        out_specs=pl.BlockSpec((1, n0, C_out), lambda n, b: (n, b, 0)),
        scratch_shapes=[pltpu.VMEM((n2 + 2 * PADH, C_in), bf16),
                        pltpu.VMEM((n1 + 2 * PADH, C_out), bf16)],
        compiler_params=pltpu.CompilerParams(
            dimension_semantics=("parallel", "arbitrary"),
            vmem_limit_bytes=vmem_limit),
    )(x_flat, top, bot, *consts)

    # (N, P, C_out) -> NCHW.
    return out.reshape(N, H, W, C_out).transpose(0, 3, 1, 2)


def resblock_ref(x, p, groups1, groups2):
    """Pure-JAX reference (inference-mode BN folded to scale/shift)."""
    dn = ("NCHW", "OIHW", "NCHW")

    def bn(y, s, b):
        return y * s[None, :, None, None] + b[None, :, None, None]

    if "wsc" in p:
        ident = jax.lax.conv_general_dilated(x, p["wsc"], (1, 1), [(0, 0), (0, 0)],
                                             dimension_numbers=dn)
        ident = bn(ident, p["ssc"], p["bsc"])
    else:
        ident = x

    out = jnp.maximum(bn(x, p["s1"], p["b1"]), 0.0)
    out = jax.lax.conv_general_dilated(out, p["w1"], (1, 1), [(1, 1), (1, 1)],
                                       dimension_numbers=dn,
                                       feature_group_count=groups1)
    out = out + p["bias1"][None, :, None, None]
    out = jnp.maximum(bn(out, p["s2"], p["b2"]), 0.0)
    out = jax.lax.conv_general_dilated(out, p["w2"], (1, 1), [(1, 1), (1, 1)],
                                       dimension_numbers=dn,
                                       feature_group_count=groups2)
    out = out + p["bias2"][None, :, None, None]
    return out + ident


def _fold_bn(gamma, beta, mean, var, eps=1e-5):
    s = gamma / jnp.sqrt(var + eps)
    return s, beta - mean * s


def _make_params(key, c_in, c_out, groups1, groups2, with_shortcut):
    f32 = jnp.float32
    ks = jax.random.split(key, 8)

    def bn_params(k, c):
        kk = jax.random.split(k, 4)
        g = 1.0 + 0.1 * jax.random.normal(kk[0], (c,), f32)
        be = 0.1 * jax.random.normal(kk[1], (c,), f32)
        m = 0.1 * jax.random.normal(kk[2], (c,), f32)
        v = jax.random.uniform(kk[3], (c,), f32, 0.5, 1.5)
        return _fold_bn(g, be, m, v)

    p = {}
    p["s1"], p["b1"] = bn_params(ks[0], c_in)
    p["w1"] = 0.2 * jax.random.normal(ks[1], (c_out, c_in // groups1, 3, 3), f32)
    p["bias1"] = 0.1 * jax.random.normal(ks[2], (c_out,), f32)
    p["s2"], p["b2"] = bn_params(ks[3], c_out)
    p["w2"] = 0.2 * jax.random.normal(ks[4], (c_out, c_out // groups2, 3, 3), f32)
    p["bias2"] = 0.1 * jax.random.normal(ks[5], (c_out,), f32)
    if with_shortcut:
        p["wsc"] = 0.2 * jax.random.normal(ks[6], (c_out, c_in, 1, 1), f32)
        p["ssc"], p["bsc"] = bn_params(ks[7], c_out)
    return p


if __name__ == "__main__":
    key = jax.random.PRNGKey(0)
    kA_p, kA_x, kB_p, kB_x = jax.random.split(key, 4)

    # --- config A: in_channels != out_channels -> 1x1-conv+BN shortcut, 4 bands ---
    N, C_in, C_out, H, W = 2, 4, 8, 16, 16
    groups1 = math.gcd(C_in, C_out)   # conv1 groups (module uses gcd)
    groups2 = 4                       # conv2 groups (hard-coded in the module)
    pA = _make_params(kA_p, C_in, C_out, groups1, groups2, with_shortcut=True)
    xA = jax.random.normal(kA_x, (N, C_in, H, W), jnp.float32)

    outA = jax.block_until_ready(resblock_pallas(xA, pA, groups1, groups2, band_rows=4))
    refA = resblock_ref(xA, pA, groups1, groups2)
    errA = float(jnp.max(jnp.abs(outA - refA)))
    assert outA.shape == (N, C_out, H, W)
    assert errA < 5e-2, f"config A (conv shortcut) max abs error {errA}"

    # --- config B: in_channels == out_channels -> Identity shortcut, auto bands ---
    C = 8
    groups1b = math.gcd(C, C)
    pB = _make_params(kB_p, C, C, groups1b, groups2, with_shortcut=False)
    xB = jax.random.normal(kB_x, (N, C, H, W), jnp.float32)

    outB = jax.block_until_ready(resblock_pallas(xB, pB, groups1b, groups2))
    refB = resblock_ref(xB, pB, groups1b, groups2)
    errB = float(jnp.max(jnp.abs(outB - refB)))
    assert outB.shape == (N, C, H, W)
    assert errB < 5e-2, f"config B (identity shortcut) max abs error {errB}"

    print("KERNEL_OK")
</pallas_src>

<mosaic_0001>
module attributes {stable_mosaic.version = 11 : i64} {
  func.func @kernel(%arg0: i32, %arg1: i32, %arg2: memref<1x64x4xf32, #tpu.memory_space<vmem>>, %arg3: memref<1x1x32x4xf32, #tpu.memory_space<vmem>>, %arg4: memref<1x1x32x4xf32, #tpu.memory_space<vmem>>, %arg5: memref<1x4xf32, #tpu.memory_space<vmem>>, %arg6: memref<1x4xf32, #tpu.memory_space<vmem>>, %arg7: memref<1x8xf32, #tpu.memory_space<vmem>>, %arg8: memref<1x8xf32, #tpu.memory_space<vmem>>, %arg9: memref<9x4x8xbf16, #tpu.memory_space<vmem>>, %arg10: memref<9x8x8xbf16, #tpu.memory_space<vmem>>, %arg11: memref<4x8xbf16, #tpu.memory_space<vmem>>, %arg12: memref<1x8xf32, #tpu.memory_space<vmem>>, %arg13: memref<1x8xf32, #tpu.memory_space<vmem>>, %arg14: memref<1x64x8xf32, #tpu.memory_space<vmem>>, %arg15: memref<144x4xbf16, #tpu.memory_space<vmem>>, %arg16: memref<112x8xbf16, #tpu.memory_space<vmem>>) attributes {dimension_semantics = [#tpu.dimension_semantics<parallel>, #tpu.dimension_semantics<arbitrary>], iteration_bounds = array<i64: 2, 4>, scalar_prefetch = 0 : i64, scratch_operands = 2 : i64, tpu.core_type = #tpu.core_type<tc>, window_params = [{transform_indices = @transform_0, window_bounds = array<i64: 1, 64, 4>}, {transform_indices = @transform_1, window_bounds = array<i64: 1, 1, 32, 4>}, {transform_indices = @transform_2, window_bounds = array<i64: 1, 1, 32, 4>}, {pipeline_mode = #tpu.pipeline_mode<synchronous>, transform_indices = @transform_3, window_bounds = array<i64: 1, 4>}, {pipeline_mode = #tpu.pipeline_mode<synchronous>, transform_indices = @transform_4, window_bounds = array<i64: 1, 4>}, {pipeline_mode = #tpu.pipeline_mode<synchronous>, transform_indices = @transform_5, window_bounds = array<i64: 1, 8>}, {pipeline_mode = #tpu.pipeline_mode<synchronous>, transform_indices = @transform_6, window_bounds = array<i64: 1, 8>}, {pipeline_mode = #tpu.pipeline_mode<synchronous>, transform_indices = @transform_7, window_bounds = array<i64: 9, 4, 8>}, {pipeline_mode = #tpu.pipeline_mode<synchronous>, transform_indices = @transform_8, window_bounds = array<i64: 9, 8, 8>}, {pipeline_mode = #tpu.pipeline_mode<synchronous>, transform_indices = @transform_9, window_bounds = array<i64: 4, 8>}, {pipeline_mode = #tpu.pipeline_mode<synchronous>, transform_indices = @transform_10, window_bounds = array<i64: 1, 8>}, {pipeline_mode = #tpu.pipeline_mode<synchronous>, transform_indices = @transform_11, window_bounds = array<i64: 1, 8>}, {transform_indices = @transform_12, window_bounds = array<i64: 1, 64, 8>}]} {
    %c0 = arith.constant 0 : index
    %c0_0 = arith.constant 0 : index
    %0 = vector.load %arg5[%c0, %c0_0] : memref<1x4xf32, #tpu.memory_space<vmem>>, vector<1x4xf32>
    %c0_1 = arith.constant 0 : index
    %c0_2 = arith.constant 0 : index
    %1 = vector.load %arg6[%c0_1, %c0_2] : memref<1x4xf32, #tpu.memory_space<vmem>>, vector<1x4xf32>
    %c0_3 = arith.constant 0 : index
    %c0_4 = arith.constant 0 : index
    %c0_5 = arith.constant 0 : index
    %2 = vector.load %arg2[%c0_3, %c0_4, %c0_5] : memref<1x64x4xf32, #tpu.memory_space<vmem>>, vector<1x64x4xf32>
    %3 = vector.shape_cast %2 : vector<1x64x4xf32> to vector<64x4xf32>
    %cst = arith.constant 0.000000e+00 : bf16
    %4 = vector.broadcast %cst : bf16 to vector<8x4xbf16>
    %cst_6 = arith.constant 0.000000e+00 : bf16
    %5 = vector.broadcast %cst_6 : bf16 to vector<32x4xbf16>
    %c0_7 = arith.constant 0 : index
    %c0_8 = arith.constant 0 : index
    %6 = vector.load %arg15[%c0_7, %c0_8] : memref<144x4xbf16, #tpu.memory_space<vmem>>, vector<8x4xbf16>
    tpu.vector_store %arg15[%c0_7, %c0_8], %4 {strides = array<i32>} : memref<144x4xbf16, #tpu.memory_space<vmem>>, vector<8x4xbf16>,
    %c136 = arith.constant 136 : index
    %c0_9 = arith.constant 0 : index
    %7 = vector.load %arg15[%c136, %c0_9] : memref<144x4xbf16, #tpu.memory_space<vmem>>, vector<8x4xbf16>
    tpu.vector_store %arg15[%c136, %c0_9], %4 {strides = array<i32>} : memref<144x4xbf16, #tpu.memory_space<vmem>>, vector<8x4xbf16>,
    %8 = vector.broadcast %0 : vector<1x4xf32> to vector<64x4xf32>
    %9 = arith.mulf %3, %8 : vector<64x4xf32>
    %10 = vector.broadcast %1 : vector<1x4xf32> to vector<64x4xf32>
    %11 = arith.addf %9, %10 : vector<64x4xf32>
    %cst_10 = arith.constant 0.000000e+00 : f32
    %12 = vector.broadcast %cst_10 : f32 to vector<64x4xf32>
    %13 = arith.maximumf %11, %12 : vector<64x4xf32>
    %14 = arith.truncf %13 : vector<64x4xf32> to vector<64x4xbf16>
    %c40 = arith.constant 40 : index
    %c0_11 = arith.constant 0 : index
    %15 = vector.load %arg15[%c40, %c0_11] : memref<144x4xbf16, #tpu.memory_space<vmem>>, vector<64x4xbf16>
    tpu.vector_store %arg15[%c40, %c0_11], %14 {strides = array<i32>} : memref<144x4xbf16, #tpu.memory_space<vmem>>, vector<64x4xbf16>,
    %c8 = arith.constant 8 : index
    %c0_12 = arith.constant 0 : index
    %16 = vector.load %arg15[%c8, %c0_12] : memref<144x4xbf16, #tpu.memory_space<vmem>>, vector<32x4xbf16>
    tpu.vector_store %arg15[%c8, %c0_12], %5 {strides = array<i32>} : memref<144x4xbf16, #tpu.memory_space<vmem>>, vector<32x4xbf16>,
    %c104 = arith.constant 104 : index
    %c0_13 = arith.constant 0 : index
    %17 = vector.load %arg15[%c104, %c0_13] : memref<144x4xbf16, #tpu.memory_space<vmem>>, vector<32x4xbf16>
    tpu.vector_store %arg15[%c104, %c0_13], %5 {strides = array<i32>} : memref<144x4xbf16, #tpu.memory_space<vmem>>, vector<32x4xbf16>,
    %c0_i32 = arith.constant 0 : i32
    %18 = arith.cmpi sgt, %arg1, %c0_i32 : i32
    %19 = arith.extui %18 : i1 to i32
    %c0_i32_14 = arith.constant 0 : i32
    %20 = arith.cmpi ne, %19, %c0_i32_14 : i32
    scf.if %20 {
      %c0_143 = arith.constant 0 : index
      %c0_144 = arith.constant 0 : index
      %c0_145 = arith.constant 0 : index
      %c0_146 = arith.constant 0 : index
      %180 = vector.load %arg3[%c0_143, %c0_144, %c0_145, %c0_146] : memref<1x1x32x4xf32, #tpu.memory_space<vmem>>, vector<1x1x32x4xf32>
      %181 = vector.shape_cast %180 : vector<1x1x32x4xf32> to vector<32x4xf32>
      %182 = vector.broadcast %0 : vector<1x4xf32> to vector<32x4xf32>
      %183 = arith.mulf %181, %182 : vector<32x4xf32>
      %184 = vector.broadcast %1 : vector<1x4xf32> to vector<32x4xf32>
      %185 = arith.addf %183, %184 : vector<32x4xf32>
      %cst_147 = arith.constant 0.000000e+00 : f32
      %186 = vector.broadcast %cst_147 : f32 to vector<32x4xf32>
      %187 = arith.maximumf %185, %186 : vector<32x4xf32>
      %188 = arith.truncf %187 : vector<32x4xf32> to vector<32x4xbf16>
      %c8_148 = arith.constant 8 : index
      %c0_149 = arith.constant 0 : index
      %189 = vector.load %arg15[%c8_148, %c0_149] : memref<144x4xbf16, #tpu.memory_space<vmem>>, vector<32x4xbf16>
      tpu.vector_store %arg15[%c8_148, %c0_149], %188 {strides = array<i32>} : memref<144x4xbf16, #tpu.memory_space<vmem>>, vector<32x4xbf16>,
    } else {
    }
    %c3_i32 = arith.constant 3 : i32
    %21 = arith.cmpi slt, %arg1, %c3_i32 : i32
    %22 = arith.extui %21 : i1 to i32
    %c0_i32_15 = arith.constant 0 : i32
    %23 = arith.cmpi ne, %22, %c0_i32_15 : i32
    scf.if %23 {
      %c0_143 = arith.constant 0 : index
      %c0_144 = arith.constant 0 : index
      %c0_145 = arith.constant 0 : index
      %c0_146 = arith.constant 0 : index
      %180 = vector.load %arg4[%c0_143, %c0_144, %c0_145, %c0_146] : memref<1x1x32x4xf32, #tpu.memory_space<vmem>>, vector<1x1x32x4xf32>
      %181 = vector.shape_cast %180 : vector<1x1x32x4xf32> to vector<32x4xf32>
      %182 = vector.broadcast %0 : vector<1x4xf32> to vector<32x4xf32>
      %183 = arith.mulf %181, %182 : vector<32x4xf32>
      %184 = vector.broadcast %1 : vector<1x4xf32> to vector<32x4xf32>
      %185 = arith.addf %183, %184 : vector<32x4xf32>
      %cst_147 = arith.constant 0.000000e+00 : f32
      %186 = vector.broadcast %cst_147 : f32 to vector<32x4xf32>
      %187 = arith.maximumf %185, %186 : vector<32x4xf32>
      %188 = arith.truncf %187 : vector<32x4xf32> to vector<32x4xbf16>
      %c104_148 = arith.constant 104 : index
      %c0_149 = arith.constant 0 : index
      %189 = vector.load %arg15[%c104_148, %c0_149] : memref<144x4xbf16, #tpu.memory_space<vmem>>, vector<32x4xbf16>
      tpu.vector_store %arg15[%c104_148, %c0_149], %188 {strides = array<i32>} : memref<144x4xbf16, #tpu.memory_space<vmem>>, vector<32x4xbf16>,
    } else {
    }
    %24 = tpu.iota {dimensions = array<i32: 0>} : vector<96x1xi32>
    %c16_i32 = arith.constant 16 : i32
    %c0_i32_16 = arith.constant 0 : i32
    %25 = arith.cmpi eq, %c16_i32, %c0_i32_16 : i32
    %c1_i32 = arith.constant 1 : i32
    %26 = arith.select %25, %c1_i32, %c16_i32 : i32
    %27 = vector.broadcast %26 : i32 to vector<96x1xi32>
    %28 = arith.remsi %24, %27 : vector<96x1xi32>
    %c0_i32_17 = arith.constant 0 : i32
    %29 = vector.broadcast %c0_i32_17 : i32 to vector<96x1xi32>
    %30 = arith.cmpi ne, %28, %29 : vector<96x1xi32>
    %c0_i32_18 = arith.constant 0 : i32
    %31 = vector.broadcast %c0_i32_18 : i32 to vector<96x1xi32>
    %32 = arith.cmpi slt, %28, %31 : vector<96x1xi32>
    %c0_i32_19 = arith.constant 0 : i32
    %33 = arith.cmpi slt, %26, %c0_i32_19 : i32
    %34 = vector.broadcast %33 : i1 to vector<96x1xi1>
    %35 = vector.broadcast %34 : vector<96x1xi1> to vector<96x1xi1>
    %36 = arith.xori %32, %35 : vector<96x1xi1>
    %37 = arith.andi %36, %30 : vector<96x1xi1>
    %38 = vector.broadcast %26 : i32 to vector<96x1xi32>
    %39 = arith.addi %28, %38 : vector<96x1xi32>
    %40 = arith.select %37, %39, %28 : vector<96x1xi1>, vector<96x1xi32>
    %c0_i32_20 = arith.constant 0 : i32
    %41 = vector.broadcast %c0_i32_20 : i32 to vector<96x1xi32>
    %42 = arith.cmpi sgt, %40, %41 : vector<96x1xi32>
    %43 = arith.extui %42 : vector<96x1xi1> to vector<96x1xi32>
    %44 = arith.sitofp %43 : vector<96x1xi32> to vector<96x1xf32>
    %c15_i32 = arith.constant 15 : i32
    %45 = vector.broadcast %c15_i32 : i32 to vector<96x1xi32>
    %46 = arith.cmpi slt, %40, %45 : vector<96x1xi32>
    %47 = arith.extui %46 : vector<96x1xi1> to vector<96x1xi32>
    %48 = arith.sitofp %47 : vector<96x1xi32> to vector<96x1xf32>
    %c7 = arith.constant 7 : index
    %c0_21 = arith.constant 0 : index
    %49 = vector.load %arg15[%c7, %c0_21] : memref<144x4xbf16, #tpu.memory_space<vmem>>, vector<96x4xbf16>
    %c0_22 = arith.constant 0 : index
    %c0_23 = arith.constant 0 : index
    %c0_24 = arith.constant 0 : index
    %50 = vector.load %arg9[%c0_22, %c0_23, %c0_24] : memref<9x4x8xbf16, #tpu.memory_space<vmem>>, vector<1x4x8xbf16>
    %51 = vector.shape_cast %50 : vector<1x4x8xbf16> to vector<4x8xbf16>
    %cst_25 = arith.constant dense<0.000000e+00> : vector<96x8xf32>
    %52 = tpu.matmul %49, %51, %cst_25 {dimension_numbers = #tpu.dot_dimension_numbers<[1], [0], [0], [1], [0, 0, 1, 1], [], []>} : vector<96x4xbf16>, vector<4x8xbf16>, vector<96x8xf32> -> vector<96x8xf32>
    %c23 = arith.constant 23 : index
    %c0_26 = arith.constant 0 : index
    %53 = vector.load %arg15[%c23, %c0_26] : memref<144x4xbf16, #tpu.memory_space<vmem>>, vector<96x4xbf16>
    %c3 = arith.constant 3 : index
    %c0_27 = arith.constant 0 : index
    %c0_28 = arith.constant 0 : index
    %54 = vector.load %arg9[%c3, %c0_27, %c0_28] : memref<9x4x8xbf16, #tpu.memory_space<vmem>>, vector<1x4x8xbf16>
    %55 = vector.shape_cast %54 : vector<1x4x8xbf16> to vector<4x8xbf16>
    %cst_29 = arith.constant dense<0.000000e+00> : vector<96x8xf32>
    %56 = tpu.matmul %53, %55, %cst_29 {dimension_numbers = #tpu.dot_dimension_numbers<[1], [0], [0], [1], [0, 0, 1, 1], [], []>} : vector<96x4xbf16>, vector<4x8xbf16>, vector<96x8xf32> -> vector<96x8xf32>
    %57 = arith.addf %52, %56 : vector<96x8xf32>
    %c39 = arith.constant 39 : index
    %c0_30 = arith.constant 0 : index
    %58 = vector.load %arg15[%c39, %c0_30] : memref<144x4xbf16, #tpu.memory_space<vmem>>, vector<96x4xbf16>
    %c6 = arith.constant 6 : index
    %c0_31 = arith.constant 0 : index
    %c0_32 = arith.constant 0 : index
    %59 = vector.load %arg9[%c6, %c0_31, %c0_32] : memref<9x4x8xbf16, #tpu.memory_space<vmem>>, vector<1x4x8xbf16>
    %60 = vector.shape_cast %59 : vector<1x4x8xbf16> to vector<4x8xbf16>
    %cst_33 = arith.constant dense<0.000000e+00> : vector<96x8xf32>
    %61 = tpu.matmul %58, %60, %cst_33 {dimension_numbers = #tpu.dot_dimension_numbers<[1], [0], [0], [1], [0, 0, 1, 1], [], []>} : vector<96x4xbf16>, vector<4x8xbf16>, vector<96x8xf32> -> vector<96x8xf32>
    %62 = arith.addf %57, %61 : vector<96x8xf32>
    %63 = vector.broadcast %44 : vector<96x1xf32> to vector<96x8xf32>
    %64 = arith.mulf %62, %63 : vector<96x8xf32>
    %c8_34 = arith.constant 8 : index
    %c0_35 = arith.constant 0 : index
    %65 = vector.load %arg15[%c8_34, %c0_35] : memref<144x4xbf16, #tpu.memory_space<vmem>>, vector<96x4xbf16>
    %c1 = arith.constant 1 : index
    %c0_36 = arith.constant 0 : index
    %c0_37 = arith.constant 0 : index
    %66 = vector.load %arg9[%c1, %c0_36, %c0_37] : memref<9x4x8xbf16, #tpu.memory_space<vmem>>, vector<1x4x8xbf16>
    %67 = vector.shape_cast %66 : vector<1x4x8xbf16> to vector<4x8xbf16>
    %cst_38 = arith.constant dense<0.000000e+00> : vector<96x8xf32>
    %68 = tpu.matmul %65, %67, %cst_38 {dimension_numbers = #tpu.dot_dimension_numbers<[1], [0], [0], [1], [0, 0, 1, 1], [], []>} : vector<96x4xbf16>, vector<4x8xbf16>, vector<96x8xf32> -> vector<96x8xf32>
    %c24 = arith.constant 24 : index
    %c0_39 = arith.constant 0 : index
    %69 = vector.load %arg15[%c24, %c0_39] : memref<144x4xbf16, #tpu.memory_space<vmem>>, vector<96x4xbf16>
    %c4 = arith.constant 4 : index
    %c0_40 = arith.constant 0 : index
    %c0_41 = arith.constant 0 : index
    %70 = vector.load %arg9[%c4, %c0_40, %c0_41] : memref<9x4x8xbf16, #tpu.memory_space<vmem>>, vector<1x4x8xbf16>
    %71 = vector.shape_cast %70 : vector<1x4x8xbf16> to vector<4x8xbf16>
    %cst_42 = arith.constant dense<0.000000e+00> : vector<96x8xf32>
    %72 = tpu.matmul %69, %71, %cst_42 {dimension_numbers = #tpu.dot_dimension_numbers<[1], [0], [0], [1], [0, 0, 1, 1], [], []>} : vector<96x4xbf16>, vector<4x8xbf16>, vector<96x8xf32> -> vector<96x8xf32>
    %73 = arith.addf %68, %72 : vector<96x8xf32>
    %c40_43 = arith.constant 40 : index
    %c0_44 = arith.constant 0 : index
    %74 = vector.load %arg15[%c40_43, %c0_44] : memref<144x4xbf16, #tpu.memory_space<vmem>>, vector<96x4xbf16>
    %c7_45 = arith.constant 7 : index
    %c0_46 = arith.constant 0 : index
    %c0_47 = arith.constant 0 : index
    %75 = vector.load %arg9[%c7_45, %c0_46, %c0_47] : memref<9x4x8xbf16, #tpu.memory_space<vmem>>, vector<1x4x8xbf16>
    %76 = vector.shape_cast %75 : vector<1x4x8xbf16> to vector<4x8xbf16>
    %cst_48 = arith.constant dense<0.000000e+00> : vector<96x8xf32>
    %77 = tpu.matmul %74, %76, %cst_48 {dimension_numbers = #tpu.dot_dimension_numbers<[1], [0], [0], [1], [0, 0, 1, 1], [], []>} : vector<96x4xbf16>, vector<4x8xbf16>, vector<96x8xf32> -> vector<96x8xf32>
    %78 = arith.addf %73, %77 : vector<96x8xf32>
    %79 = arith.addf %64, %78 : vector<96x8xf32>
    %c9 = arith.constant 9 : index
    %c0_49 = arith.constant 0 : index
    %80 = vector.load %arg15[%c9, %c0_49] : memref<144x4xbf16, #tpu.memory_space<vmem>>, vector<96x4xbf16>
    %c2 = arith.constant 2 : index
    %c0_50 = arith.constant 0 : index
    %c0_51 = arith.constant 0 : index
    %81 = vector.load %arg9[%c2, %c0_50, %c0_51] : memref<9x4x8xbf16, #tpu.memory_space<vmem>>, vector<1x4x8xbf16>
    %82 = vector.shape_cast %81 : vector<1x4x8xbf16> to vector<4x8xbf16>
    %cst_52 = arith.constant dense<0.000000e+00> : vector<96x8xf32>
    %83 = tpu.matmul %80, %82, %cst_52 {dimension_numbers = #tpu.dot_dimension_numbers<[1], [0], [0], [1], [0, 0, 1, 1], [], []>} : vector<96x4xbf16>, vector<4x8xbf16>, vector<96x8xf32> -> vector<96x8xf32>
    %c25 = arith.constant 25 : index
    %c0_53 = arith.constant 0 : index
    %84 = vector.load %arg15[%c25, %c0_53] : memref<144x4xbf16, #tpu.memory_space<vmem>>, vector<96x4xbf16>
    %c5 = arith.constant 5 : index
    %c0_54 = arith.constant 0 : index
    %c0_55 = arith.constant 0 : index
    %85 = vector.load %arg9[%c5, %c0_54, %c0_55] : memref<9x4x8xbf16, #tpu.memory_space<vmem>>, vector<1x4x8xbf16>
    %86 = vector.shape_cast %85 : vector<1x4x8xbf16> to vector<4x8xbf16>
    %cst_56 = arith.constant dense<0.000000e+00> : vector<96x8xf32>
    %87 = tpu.matmul %84, %86, %cst_56 {dimension_numbers = #tpu.dot_dimension_numbers<[1], [0], [0], [1], [0, 0, 1, 1], [], []>} : vector<96x4xbf16>, vector<4x8xbf16>, vector<96x8xf32> -> vector<96x8xf32>
    %88 = arith.addf %83, %87 : vector<96x8xf32>
    %c41 = arith.constant 41 : index
    %c0_57 = arith.constant 0 : index
    %89 = vector.load %arg15[%c41, %c0_57] : memref<144x4xbf16, #tpu.memory_space<vmem>>, vector<96x4xbf16>
    %c8_58 = arith.constant 8 : index
    %c0_59 = arith.constant 0 : index
    %c0_60 = arith.constant 0 : index
    %90 = vector.load %arg9[%c8_58, %c0_59, %c0_60] : memref<9x4x8xbf16, #tpu.memory_space<vmem>>, vector<1x4x8xbf16>
    %91 = vector.shape_cast %90 : vector<1x4x8xbf16> to vector<4x8xbf16>
    %cst_61 = arith.constant dense<0.000000e+00> : vector<96x8xf32>
    %92 = tpu.matmul %89, %91, %cst_61 {dimension_numbers = #tpu.dot_dimension_numbers<[1], [0], [0], [1], [0, 0, 1, 1], [], []>} : vector<96x4xbf16>, vector<4x8xbf16>, vector<96x8xf32> -> vector<96x8xf32>
    %93 = arith.addf %88, %92 : vector<96x8xf32>
    %94 = vector.broadcast %48 : vector<96x1xf32> to vector<96x8xf32>
    %95 = arith.mulf %93, %94 : vector<96x8xf32>
    %96 = arith.addf %79, %95 : vector<96x8xf32>
    %c0_62 = arith.constant 0 : index
    %c0_63 = arith.constant 0 : index
    %97 = vector.load %arg7[%c0_62, %c0_63] : memref<1x8xf32, #tpu.memory_space<vmem>>, vector<1x8xf32>
    %98 = vector.broadcast %97 : vector<1x8xf32> to vector<96x8xf32>
    %99 = arith.mulf %96, %98 : vector<96x8xf32>
    %c0_64 = arith.constant 0 : index
    %c0_65 = arith.constant 0 : index
    %100 = vector.load %arg8[%c0_64, %c0_65] : memref<1x8xf32, #tpu.memory_space<vmem>>, vector<1x8xf32>
    %101 = vector.broadcast %100 : vector<1x8xf32> to vector<96x8xf32>
    %102 = arith.addf %99, %101 : vector<96x8xf32>
    %cst_66 = arith.constant 0.000000e+00 : f32
    %103 = vector.broadcast %cst_66 : f32 to vector<96x8xf32>
    %104 = arith.maximumf %102, %103 : vector<96x8xf32>
    %105 = arith.truncf %104 : vector<96x8xf32> to vector<96x8xbf16>
    %cst_67 = arith.constant 0.000000e+00 : bf16
    %106 = vector.broadcast %cst_67 : bf16 to vector<8x8xbf16>
    %cst_68 = arith.constant 0.000000e+00 : bf16
    %107 = vector.broadcast %cst_68 : bf16 to vector<16x8xbf16>
    %c0_69 = arith.constant 0 : index
    %c0_70 = arith.constant 0 : index
    %108 = vector.load %arg16[%c0_69, %c0_70] : memref<112x8xbf16, #tpu.memory_space<vmem>>, vector<8x8xbf16>
    tpu.vector_store %arg16[%c0_69, %c0_70], %106 {strides = array<i32>} : memref<112x8xbf16, #tpu.memory_space<vmem>>, vector<8x8xbf16>,
    %c104_71 = arith.constant 104 : index
    %c0_72 = arith.constant 0 : index
    %109 = vector.load %arg16[%c104_71, %c0_72] : memref<112x8xbf16, #tpu.memory_space<vmem>>, vector<8x8xbf16>
    tpu.vector_store %arg16[%c104_71, %c0_72], %106 {strides = array<i32>} : memref<112x8xbf16, #tpu.memory_space<vmem>>, vector<8x8xbf16>,
    %c8_73 = arith.constant 8 : index
    %c0_74 = arith.constant 0 : index
    %110 = vector.load %arg16[%c8_73, %c0_74] : memref<112x8xbf16, #tpu.memory_space<vmem>>, vector<96x8xbf16>
    tpu.vector_store %arg16[%c8_73, %c0_74], %105 {strides = array<i32>} : memref<112x8xbf16, #tpu.memory_space<vmem>>, vector<96x8xbf16>,
    %c0_i32_75 = arith.constant 0 : i32
    %111 = arith.cmpi eq, %arg1, %c0_i32_75 : i32
    %112 = arith.extui %111 : i1 to i32
    %c0_i32_76 = arith.constant 0 : i32
    %113 = arith.cmpi ne, %112, %c0_i32_76 : i32
    scf.if %113 {
      %c8_143 = arith.constant 8 : index
      %c0_144 = arith.constant 0 : index
      %180 = vector.load %arg16[%c8_143, %c0_144] : memref<112x8xbf16, #tpu.memory_space<vmem>>, vector<16x8xbf16>
      tpu.vector_store %arg16[%c8_143, %c0_144], %107 {strides = array<i32>} : memref<112x8xbf16, #tpu.memory_space<vmem>>, vector<16x8xbf16>,
    } else {
    }
    %c3_i32_77 = arith.constant 3 : i32
    %114 = arith.cmpi eq, %arg1, %c3_i32_77 : i32
    %115 = arith.extui %114 : i1 to i32
    %c0_i32_78 = arith.constant 0 : i32
    %116 = arith.cmpi ne, %115, %c0_i32_78 : i32
    scf.if %116 {
      %c88 = arith.constant 88 : index
      %c0_143 = arith.constant 0 : index
      %180 = vector.load %arg16[%c88, %c0_143] : memref<112x8xbf16, #tpu.memory_space<vmem>>, vector<16x8xbf16>
      tpu.vector_store %arg16[%c88, %c0_143], %107 {strides = array<i32>} : memref<112x8xbf16, #tpu.memory_space<vmem>>, vector<16x8xbf16>,
    } else {
    }
    %117 = vector.extract_strided_slice %44 {offsets = [0, 0], sizes = [64, 1], strides = [1, 1]} : vector<96x1xf32> to vector<64x1xf32>
    %118 = vector.extract_strided_slice %48 {offsets = [0, 0], sizes = [64, 1], strides = [1, 1]} : vector<96x1xf32> to vector<64x1xf32>
    %c7_79 = arith.constant 7 : index
    %c0_80 = arith.constant 0 : index
    %119 = vector.load %arg16[%c7_79, %c0_80] : memref<112x8xbf16, #tpu.memory_space<vmem>>, vector<64x8xbf16>
    %c0_81 = arith.constant 0 : index
    %c0_82 = arith.constant 0 : index
    %c0_83 = arith.constant 0 : index
    %120 = vector.load %arg10[%c0_81, %c0_82, %c0_83] : memref<9x8x8xbf16, #tpu.memory_space<vmem>>, vector<1x8x8xbf16>
    %121 = vector.shape_cast %120 : vector<1x8x8xbf16> to vector<8x8xbf16>
    %cst_84 = arith.constant dense<0.000000e+00> : vector<64x8xf32>
    %122 = tpu.matmul %119, %121, %cst_84 {dimension_numbers = #tpu.dot_dimension_numbers<[1], [0], [0], [1], [0, 0, 1, 1], [], []>} : vector<64x8xbf16>, vector<8x8xbf16>, vector<64x8xf32> -> vector<64x8xf32>
    %c23_85 = arith.constant 23 : index
    %c0_86 = arith.constant 0 : index
    %123 = vector.load %arg16[%c23_85, %c0_86] : memref<112x8xbf16, #tpu.memory_space<vmem>>, vector<64x8xbf16>
    %c3_87 = arith.constant 3 : index
    %c0_88 = arith.constant 0 : index
    %c0_89 = arith.constant 0 : index
    %124 = vector.load %arg10[%c3_87, %c0_88, %c0_89] : memref<9x8x8xbf16, #tpu.memory_space<vmem>>, vector<1x8x8xbf16>
    %125 = vector.shape_cast %124 : vector<1x8x8xbf16> to vector<8x8xbf16>
    %cst_90 = arith.constant dense<0.000000e+00> : vector<64x8xf32>
    %126 = tpu.matmul %123, %125, %cst_90 {dimension_numbers = #tpu.dot_dimension_numbers<[1], [0], [0], [1], [0, 0, 1, 1], [], []>} : vector<64x8xbf16>, vector<8x8xbf16>, vector<64x8xf32> -> vector<64x8xf32>
    %127 = arith.addf %122, %126 : vector<64x8xf32>
    %c39_91 = arith.constant 39 : index
    %c0_92 = arith.constant 0 : index
    %128 = vector.load %arg16[%c39_91, %c0_92] : memref<112x8xbf16, #tpu.memory_space<vmem>>, vector<64x8xbf16>
    %c6_93 = arith.constant 6 : index
    %c0_94 = arith.constant 0 : index
    %c0_95 = arith.constant 0 : index
    %129 = vector.load %arg10[%c6_93, %c0_94, %c0_95] : memref<9x8x8xbf16, #tpu.memory_space<vmem>>, vector<1x8x8xbf16>
    %130 = vector.shape_cast %129 : vector<1x8x8xbf16> to vector<8x8xbf16>
    %cst_96 = arith.constant dense<0.000000e+00> : vector<64x8xf32>
    %131 = tpu.matmul %128, %130, %cst_96 {dimension_numbers = #tpu.dot_dimension_numbers<[1], [0], [0], [1], [0, 0, 1, 1], [], []>} : vector<64x8xbf16>, vector<8x8xbf16>, vector<64x8xf32> -> vector<64x8xf32>
    %132 = arith.addf %127, %131 : vector<64x8xf32>
    %133 = vector.broadcast %117 : vector<64x1xf32> to vector<64x8xf32>
    %134 = arith.mulf %132, %133 : vector<64x8xf32>
    %c8_97 = arith.constant 8 : index
    %c0_98 = arith.constant 0 : index
    %135 = vector.load %arg16[%c8_97, %c0_98] : memref<112x8xbf16, #tpu.memory_space<vmem>>, vector<64x8xbf16>
    %c1_99 = arith.constant 1 : index
    %c0_100 = arith.constant 0 : index
    %c0_101 = arith.constant 0 : index
    %136 = vector.load %arg10[%c1_99, %c0_100, %c0_101] : memref<9x8x8xbf16, #tpu.memory_space<vmem>>, vector<1x8x8xbf16>
    %137 = vector.shape_cast %136 : vector<1x8x8xbf16> to vector<8x8xbf16>
    %cst_102 = arith.constant dense<0.000000e+00> : vector<64x8xf32>
    %138 = tpu.matmul %135, %137, %cst_102 {dimension_numbers = #tpu.dot_dimension_numbers<[1], [0], [0], [1], [0, 0, 1, 1], [], []>} : vector<64x8xbf16>, vector<8x8xbf16>, vector<64x8xf32> -> vector<64x8xf32>
    %c24_103 = arith.constant 24 : index
    %c0_104 = arith.constant 0 : index
    %139 = vector.load %arg16[%c24_103, %c0_104] : memref<112x8xbf16, #tpu.memory_space<vmem>>, vector<64x8xbf16>
    %c4_105 = arith.constant 4 : index
    %c0_106 = arith.constant 0 : index
    %c0_107 = arith.constant 0 : index
    %140 = vector.load %arg10[%c4_105, %c0_106, %c0_107] : memref<9x8x8xbf16, #tpu.memory_space<vmem>>, vector<1x8x8xbf16>
    %141 = vector.shape_cast %140 : vector<1x8x8xbf16> to vector<8x8xbf16>
    %cst_108 = arith.constant dense<0.000000e+00> : vector<64x8xf32>
    %142 = tpu.matmul %139, %141, %cst_108 {dimension_numbers = #tpu.dot_dimension_numbers<[1], [0], [0], [1], [0, 0, 1, 1], [], []>} : vector<64x8xbf16>, vector<8x8xbf16>, vector<64x8xf32> -> vector<64x8xf32>
    %143 = arith.addf %138, %142 : vector<64x8xf32>
    %c40_109 = arith.constant 40 : index
    %c0_110 = arith.constant 0 : index
    %144 = vector.load %arg16[%c40_109, %c0_110] : memref<112x8xbf16, #tpu.memory_space<vmem>>, vector<64x8xbf16>
    %c7_111 = arith.constant 7 : index
    %c0_112 = arith.constant 0 : index
    %c0_113 = arith.constant 0 : index
    %145 = vector.load %arg10[%c7_111, %c0_112, %c0_113] : memref<9x8x8xbf16, #tpu.memory_space<vmem>>, vector<1x8x8xbf16>
    %146 = vector.shape_cast %145 : vector<1x8x8xbf16> to vector<8x8xbf16>
    %cst_114 = arith.constant dense<0.000000e+00> : vector<64x8xf32>
    %147 = tpu.matmul %144, %146, %cst_114 {dimension_numbers = #tpu.dot_dimension_numbers<[1], [0], [0], [1], [0, 0, 1, 1], [], []>} : vector<64x8xbf16>, vector<8x8xbf16>, vector<64x8xf32> -> vector<64x8xf32>
    %148 = arith.addf %143, %147 : vector<64x8xf32>
    %149 = arith.addf %134, %148 : vector<64x8xf32>
    %c9_115 = arith.constant 9 : index
    %c0_116 = arith.constant 0 : index
    %150 = vector.load %arg16[%c9_115, %c0_116] : memref<112x8xbf16, #tpu.memory_space<vmem>>, vector<64x8xbf16>
    %c2_117 = arith.constant 2 : index
    %c0_118 = arith.constant 0 : index
    %c0_119 = arith.constant 0 : index
    %151 = vector.load %arg10[%c2_117, %c0_118, %c0_119] : memref<9x8x8xbf16, #tpu.memory_space<vmem>>, vector<1x8x8xbf16>
    %152 = vector.shape_cast %151 : vector<1x8x8xbf16> to vector<8x8xbf16>
    %cst_120 = arith.constant dense<0.000000e+00> : vector<64x8xf32>
    %153 = tpu.matmul %150, %152, %cst_120 {dimension_numbers = #tpu.dot_dimension_numbers<[1], [0], [0], [1], [0, 0, 1, 1], [], []>} : vector<64x8xbf16>, vector<8x8xbf16>, vector<64x8xf32> -> vector<64x8xf32>
    %c25_121 = arith.constant 25 : index
    %c0_122 = arith.constant 0 : index
    %154 = vector.load %arg16[%c25_121, %c0_122] : memref<112x8xbf16, #tpu.memory_space<vmem>>, vector<64x8xbf16>
    %c5_123 = arith.constant 5 : index
    %c0_124 = arith.constant 0 : index
    %c0_125 = arith.constant 0 : index
    %155 = vector.load %arg10[%c5_123, %c0_124, %c0_125] : memref<9x8x8xbf16, #tpu.memory_space<vmem>>, vector<1x8x8xbf16>
    %156 = vector.shape_cast %155 : vector<1x8x8xbf16> to vector<8x8xbf16>
    %cst_126 = arith.constant dense<0.000000e+00> : vector<64x8xf32>
    %157 = tpu.matmul %154, %156, %cst_126 {dimension_numbers = #tpu.dot_dimension_numbers<[1], [0], [0], [1], [0, 0, 1, 1], [], []>} : vector<64x8xbf16>, vector<8x8xbf16>, vector<64x8xf32> -> vector<64x8xf32>
    %158 = arith.addf %153, %157 : vector<64x8xf32>
    %c41_127 = arith.constant 41 : index
    %c0_128 = arith.constant 0 : index
    %159 = vector.load %arg16[%c41_127, %c0_128] : memref<112x8xbf16, #tpu.memory_space<vmem>>, vector<64x8xbf16>
    %c8_129 = arith.constant 8 : index
    %c0_130 = arith.constant 0 : index
    %c0_131 = arith.constant 0 : index
    %160 = vector.load %arg10[%c8_129, %c0_130, %c0_131] : memref<9x8x8xbf16, #tpu.memory_space<vmem>>, vector<1x8x8xbf16>
    %161 = vector.shape_cast %160 : vector<1x8x8xbf16> to vector<8x8xbf16>
    %cst_132 = arith.constant dense<0.000000e+00> : vector<64x8xf32>
    %162 = tpu.matmul %159, %161, %cst_132 {dimension_numbers = #tpu.dot_dimension_numbers<[1], [0], [0], [1], [0, 0, 1, 1], [], []>} : vector<64x8xbf16>, vector<8x8xbf16>, vector<64x8xf32> -> vector<64x8xf32>
    %163 = arith.addf %158, %162 : vector<64x8xf32>
    %164 = vector.broadcast %118 : vector<64x1xf32> to vector<64x8xf32>
    %165 = arith.mulf %163, %164 : vector<64x8xf32>
    %166 = arith.addf %149, %165 : vector<64x8xf32>
    %167 = arith.truncf %3 : vector<64x4xf32> to vector<64x4xbf16>
    %c0_133 = arith.constant 0 : index
    %c0_134 = arith.constant 0 : index
    %168 = vector.load %arg11[%c0_133, %c0_134] : memref<4x8xbf16, #tpu.memory_space<vmem>>, vector<4x8xbf16>
    %cst_135 = arith.constant dense<0.000000e+00> : vector<64x8xf32>
    %169 = tpu.matmul %167, %168, %cst_135 {dimension_numbers = #tpu.dot_dimension_numbers<[1], [0], [0], [1], [0, 0, 1, 1], [], []>} : vector<64x4xbf16>, vector<4x8xbf16>, vector<64x8xf32> -> vector<64x8xf32>
    %c0_136 = arith.constant 0 : index
    %c0_137 = arith.constant 0 : index
    %170 = vector.load %arg12[%c0_136, %c0_137] : memref<1x8xf32, #tpu.memory_space<vmem>>, vector<1x8xf32>
    %171 = vector.broadcast %170 : vector<1x8xf32> to vector<64x8xf32>
    %172 = arith.mulf %169, %171 : vector<64x8xf32>
    %173 = arith.addf %166, %172 : vector<64x8xf32>
    %c0_138 = arith.constant 0 : index
    %c0_139 = arith.constant 0 : index
    %174 = vector.load %arg13[%c0_138, %c0_139] : memref<1x8xf32, #tpu.memory_space<vmem>>, vector<1x8xf32>
    %175 = vector.broadcast %174 : vector<1x8xf32> to vector<64x8xf32>
    %176 = arith.addf %173, %175 : vector<64x8xf32>
    %c0_140 = arith.constant 0 : index
    %c0_141 = arith.constant 0 : index
    %c0_142 = arith.constant 0 : index
    %177 = vector.load %arg14[%c0_140, %c0_141, %c0_142] : memref<1x64x8xf32, #tpu.memory_space<vmem>>, vector<1x64x8xf32>
    %178 = vector.shape_cast %177 : vector<1x64x8xf32> to vector<64x8xf32>
    %179 = vector.shape_cast %176 : vector<64x8xf32> to vector<1x64x8xf32>
    tpu.vector_store %arg14[%c0_140, %c0_141, %c0_142], %179 {strides = array<i32>} : memref<1x64x8xf32, #tpu.memory_space<vmem>>, vector<1x64x8xf32>,
    return
  }
  func.func @transform_0(%arg0: i32, %arg1: i32) -> (i32, i32, i32) {
    %c0_i32 = arith.constant 0 : i32
    %c0_i32_0 = arith.constant 0 : i32
    return %arg0, %arg1, %c0_i32 : i32, i32, i32
  }
  func.func @transform_1(%arg0: i32, %arg1: i32) -> (i32, i32, i32, i32) {
    %c0_i32 = arith.constant 0 : i32
    %c0_i32_0 = arith.constant 0 : i32
    %c0_i32_1 = arith.constant 0 : i32
    return %arg0, %arg1, %c0_i32, %c0_i32_0 : i32, i32, i32, i32
  }
  func.func @transform_2(%arg0: i32, %arg1: i32) -> (i32, i32, i32, i32) {
    %c0_i32 = arith.constant 0 : i32
    %c0_i32_0 = arith.constant 0 : i32
    %c0_i32_1 = arith.constant 0 : i32
    return %arg0, %arg1, %c0_i32, %c0_i32_0 : i32, i32, i32, i32
  }
  func.func @transform_3(%arg0: i32, %arg1: i32) -> (i32, i32) {
    %c0_i32 = arith.constant 0 : i32
    %c0_i32_0 = arith.constant 0 : i32
    %c0_i32_1 = arith.constant 0 : i32
    return %c0_i32, %c0_i32_0 : i32, i32
  }
  func.func @transform_4(%arg0: i32, %arg1: i32) -> (i32, i32) {
    %c0_i32 = arith.constant 0 : i32
    %c0_i32_0 = arith.constant 0 : i32
    %c0_i32_1 = arith.constant 0 : i32
    return %c0_i32, %c0_i32_0 : i32, i32
  }
  func.func @transform_5(%arg0: i32, %arg1: i32) -> (i32, i32) {
    %c0_i32 = arith.constant 0 : i32
    %c0_i32_0 = arith.constant 0 : i32
    %c0_i32_1 = arith.constant 0 : i32
    return %c0_i32, %c0_i32_0 : i32, i32
  }
  func.func @transform_6(%arg0: i32, %arg1: i32) -> (i32, i32) {
    %c0_i32 = arith.constant 0 : i32
    %c0_i32_0 = arith.constant 0 : i32
    %c0_i32_1 = arith.constant 0 : i32
    return %c0_i32, %c0_i32_0 : i32, i32
  }
  func.func @transform_7(%arg0: i32, %arg1: i32) -> (i32, i32, i32) {
    %c0_i32 = arith.constant 0 : i32
    %c0_i32_0 = arith.constant 0 : i32
    %c0_i32_1 = arith.constant 0 : i32
    %c0_i32_2 = arith.constant 0 : i32
    return %c0_i32, %c0_i32_0, %c0_i32_1 : i32, i32, i32
  }
  func.func @transform_8(%arg0: i32, %arg1: i32) -> (i32, i32, i32) {
    %c0_i32 = arith.constant 0 : i32
    %c0_i32_0 = arith.constant 0 : i32
    %c0_i32_1 = arith.constant 0 : i32
    %c0_i32_2 = arith.constant 0 : i32
    return %c0_i32, %c0_i32_0, %c0_i32_1 : i32, i32, i32
  }
  func.func @transform_9(%arg0: i32, %arg1: i32) -> (i32, i32) {
    %c0_i32 = arith.constant 0 : i32
    %c0_i32_0 = arith.constant 0 : i32
    %c0_i32_1 = arith.constant 0 : i32
    return %c0_i32, %c0_i32_0 : i32, i32
  }
  func.func @transform_10(%arg0: i32, %arg1: i32) -> (i32, i32) {
    %c0_i32 = arith.constant 0 : i32
    %c0_i32_0 = arith.constant 0 : i32
    %c0_i32_1 = arith.constant 0 : i32
    return %c0_i32, %c0_i32_0 : i32, i32
  }
  func.func @transform_11(%arg0: i32, %arg1: i32) -> (i32, i32) {
    %c0_i32 = arith.constant 0 : i32
    %c0_i32_0 = arith.constant 0 : i32
    %c0_i32_1 = arith.constant 0 : i32
    return %c0_i32, %c0_i32_0 : i32, i32
  }
  func.func @transform_12(%arg0: i32, %arg1: i32) -> (i32, i32, i32) {
    %c0_i32 = arith.constant 0 : i32
    %c0_i32_0 = arith.constant 0 : i32
    return %arg0, %arg1, %c0_i32 : i32, i32, i32
  }
}

</mosaic_0001>

<bundles_post_ra>
// kernel: tpu_custom_call.1
= control target key start
LH: loop header
LB: loop body
LE: loop exit
PB: predicated region body
PF: predicated region fallthrough
CT: control target
= control target key end

     0   :  { %s4399_s21 = smov 0   ;;  %s4401_s22 = smov 0   ;;  %s5333_s0 = inlined_call_operand.vmem [shape: f32[2,256,4], index: 0, kind: input, shape index: {}]   ;;  %s5334_s1 = inlined_call_operand.vmem [shape: f32[2,4,32,4], index: 1, kind: input, shape index: {}]   ;;  %s5335_s2 = inlined_call_operand.vmem [shape: f32[2,4,32,4], index: 2, kind: input, shape index: {}]   ;;  %s5336_s3 = inlined_call_operand.vmem [shape: f32[1,4], index: 3, kind: input, shape index: {}]   ;;  %s5337_s4 = inlined_call_operand.vmem [shape: f32[1,4], index: 4, kind: input, shape index: {}]   ;;  %s5338_s5 = inlined_call_operand.vmem [shape: f32[1,8], index: 5, kind: input, shape index: {}]   ;;  %s5339_s6 = inlined_call_operand.vmem [shape: f32[1,8], index: 6, kind: input, shape index: {}]   ;;  %s5340_s7 = inlined_call_operand.vmem [shape: bf16[9,4,8], index: 7, kind: input, shape index: {}]   ;;  %s5341_s8 = inlined_call_operand.vmem [shape: bf16[9,8,8], index: 8, kind: input, shape index: {}]   ;;  %s5342_s9 = inlined_call_operand.vmem [shape: bf16[4,8], index: 9, kind: input, shape index: {}]   ;;  %s5343_s10 = inlined_call_operand.vmem [shape: f32[1,8], index: 10, kind: input, shape index: {}]   ;;  %s5344_s11 = inlined_call_operand.vmem [shape: f32[1,8], index: 11, kind: input, shape index: {}]   ;;  %s5345_s12 = inlined_call_operand.vmem [shape: f32[2,256,8], index: 12, kind: output, shape index: {}]  }
   0x1   :  { %s4403_s23 = smov 0   ;;  %s4405_s24 = smov 0  }
   0x2   :  { %s4407_s25 = smov 0  }
   0x3 LB: > { %5351 = sst [smem:[#allocation4_spill]] %s4320_s23  ;;  %s31_s26 = sadd.s32 1, %s4320_s23  ;;  %s4328_s25 = sphi %s4407_s25, %s22_s25   ;;  %s4324_s24 = sphi %s4405_s24, %s5360_s24   ;;  %s4320_s23 = sphi %s4403_s23, %s5359_s23   ;;  %s4316_s22 = sphi %s4401_s22, %s5358_s22   ;;  %s4312_s21 = sphi %s4399_s21, %s5357_s21  }
   0x4   : > { %5352 = sst [smem:[#allocation5_spill]] %s4324_s24  ;;  %s34_s27 = sadd.s32 1, %s4324_s24 }
   0x5   : > { %p32_p0 = scmp.ge.s32.totalorder %s31_s26, 4  ;;  %p3621_p1 = scmp.ge.s32.totalorder %s4328_s25, 1 }
   0x6   : > { %p415_p2 = scmp.lt.s32.totalorder %s4328_s25, 9 }
   0x7   : > { %s5362_s26 = smov (%p32_p0, %s31_s26), 0  ;;  %s5364_s27 = smov (!%p32_p0, %s34_s27), %s4324_s24 }
   0x8   : > { %5353 = sst [smem:[#allocation6_spill]] %s5362_s26  ;;  %p416_p3 = pnand %p3621_p1, %p415_p2 }
   0x9   : > { %p36_p4 = scmp.ge.s32.totalorder %s5364_s27, 2  ;;  %vm532_vm0 = vcmask (!%p416_p3), 27648   ;;  %vm534_vm1 = vcmask (!%p416_p3), 31748   ;;  %s3622_s28 = sshll.u32 (!%p416_p3), %s4312_s21, 3  ;;  %v5348_v0 = vmov (!%p416_p3), 0   ;;  %vm594_vm2 = vcmask (!%p416_p3), 31744  }
   0xa   : > { %419 = sbr.rel (%p416_p3) target bundleno = 783 (0x30f), region = 68  ;;  %p484_p5 = scmp.lt.s32.totalorder (!%p416_p3), %s4316_s22, 1  ;;  %533 = vst.msk [vmem:[#allocation2] sm:$0xf] (!%p416_p3), %vm532_vm0, %v5348_v0  ;;  %601 = vst.msk [vmem:[#allocation2 + $0x10] sm:$0xf] (!%p416_p3), %vm532_vm0, %v5348_v0 }
   0xb   : > { %s5366_s27 = smov (%p36_p4, %s5364_s27), 0  ;;  %604 = vst.msk [vmem:[#allocation2 + $0x40] sm:$0xf] (!%p416_p3), %vm532_vm0, %v5348_v0  ;;  %p486_p6 = scmp.lt.s32.totalorder (!%p416_p3), %s3622_s28, 31  ;;  %v4456_v1 = vld [vmem:[%s5336_s3] ss:$0 sm:$0xff] (!%p416_p3) }
   0xc   : > { %5354 = sst [smem:[#allocation7_spill]] %s5366_s27  ;;  %535 = vst.msk [vmem:[#allocation2 + $0x40] sm:$0xf0] (!%p416_p3), %vm534_vm1, %v5348_v0  ;;  %599 = vst.msk [vmem:[#allocation2] sm:$0xf0] (!%p416_p3), %vm534_vm1, %v5348_v0  ;;  %p495_p7 = scmp.lt.s32.totalorder (!%p416_p3), %s4312_s21, 3 }
   0xd   : > { %602 = vst.msk [vmem:[#allocation2 + $0x30] sm:$0xf0] (!%p416_p3), %vm534_vm1, %v5348_v0  ;;  %v4469_v2 = vld [vmem:[%s5337_s4] ss:$0 sm:$0xff] (!%p416_p3)  ;;  %vm580_vm3 = vcmask (!%p416_p3), 1043456   ;;  %p3636_p8 = scmp.le.s32.totalorder (!%p416_p3), %s4312_s21, 0 }
   0xe   : > { %600 = vst.msk [vmem:[#allocation2 + $0x8] sm:$0xff] (!%p416_p3), %vm594_vm2, %v5348_v0  ;;  %603 = vst.msk [vmem:[#allocation2 + $0x38] sm:$0xff] (!%p416_p3), %vm594_vm2, %v5348_v0 }
  0x11   : > { %s5368_s22 = smov (!%p484_p5, %s4316_s22), 1  ;;  %s5370_s28 = smov (!%p486_p6, %s3622_s28), 31 }
  0x12   : > { %s3623_s29 = sshll.u32 %s5368_s22, 5  ;;  %s3626_s14 = sshll.u32 %s5368_s22, 4 }
  0x13   : > { %s489_s30 = sadd.s32 %s3623_s29, %s5370_s28 }
  0x14   : > { %s3624_s13 = sshll.u32 %s489_s30, 3 }
  0x15   : > { %s491_s19 = scalar_lea.vmem %s5333_s0, %s3624_s13  ;;  %s4464_s26 = scalar_lea.vmem %s5345_s12, %s3624_s13 }
  0x16   : > { %s496_s22 = scalar_select %p495_p7, %s4312_s21, 3  ;;  %v4472_v3 = vld [vmem:[%s491_s19] sm:$0xff]  ;;  %v4474_v4 = vld [vmem:[%s491_s19 + $0x8] sm:$0xff]  ;;  %v4476_v5 = vld [vmem:[%s491_s19 + $0x10] sm:$0xff] }
  0x17   : > { %v542_v6 = vmul.f32 %v4456_v1, %v4472_v3  ;;  %v543_v7 = vmul.f32 %v4456_v1, %v4474_v4  ;;  %v4482_v8 = vld [vmem:[%s491_s19 + $0x18] sm:$0xff]  ;;  %v544_v9 = vmul.f32 %v4456_v1, %v4476_v5  ;;  %v4486_v10 = vld [vmem:[%s491_s19 + $0x20] sm:$0xff]  ;;  %v4488_v11 = vld [vmem:[%s491_s19 + $0x28] sm:$0xff] }
  0x18   : > { %s3625_s23 = sshll.u32 %s496_s22, 2  ;;  %v545_v12 = vmul.f32 %v4456_v1, %v4482_v8  ;;  %v546_v13 = vmul.f32 %v4456_v1, %v4486_v10  ;;  %v547_v14 = vmul.f32 %v4456_v1, %v4488_v11  ;;  %v4496_v15 = vld [vmem:[%s491_s19 + $0x30] sm:$0xff]  ;;  %v4498_v16 = vld [vmem:[%s491_s19 + $0x38] sm:$0xff] }
  0x19   : > { %s499_s24 = sadd.s32 %s3626_s14, %s3625_s23  ;;  %v556_v17 = vadd.f32 %v4469_v2, %v542_v6  ;;  %v557_v18 = vadd.f32 %v4469_v2, %v543_v7  ;;  %v558_v19 = vadd.f32 %v4469_v2, %v544_v9  ;;  %v548_v20 = vmul.f32 %v4456_v1, %v4496_v15 }
  0x1a   : > { %s3627_s27 = sshll.u32 %s499_s24, 3  ;;  %v559_v21 = vadd.f32 %v4469_v2, %v545_v12  ;;  %v560_v22 = vadd.f32 %v4469_v2, %v546_v13  ;;  %v561_v23 = vadd.f32 %v4469_v2, %v547_v14  ;;  %v549_v24 = vmul.f32 %v4456_v1, %v4498_v16 }
  0x1b   : > { %s4513_s30 = scalar_lea.vmem %s5334_s1, %s3627_s27  ;;  %s4518_s15 = scalar_lea.vmem %s5335_s2, %s3627_s27  ;;  %v564_v25 = vmax.f32 %v556_v17, 0.0  ;;  %v565_v26 = vmax.f32 %v557_v18, 0.0  ;;  %v566_v27 = vmax.f32 %v558_v19, 0.0  ;;  %v562_v28 = vadd.f32 %v4469_v2, %v548_v20 }
  0x1c   : > { %v567_v29 = vmax.f32 %v559_v21, 0.0  ;;  %v568_v30 = vmax.f32 %v560_v22, 0.0  ;;  %v569_v31 = vmax.f32 %v561_v23, 0.0  ;;  %v563_v32 = vadd.f32 %v4469_v2, %v549_v24  ;;  %v609_v46 = vld [vmem:[%s4513_s30] sm:$0xff] (!%p3636_p8)  ;;  %v610_v47 = vld [vmem:[%s4513_s30 + $0x8] sm:$0xff] (!%p3636_p8)  ;;  %v611_v48 = vld [vmem:[%s4513_s30 + $0x10] sm:$0xff] (!%p3636_p8) }
  0x1d   : > { %v572_v33 = vpack.c.bf16 %v565_v26, %v564_v25  ;;  %v570_v34 = vmax.f32 %v562_v28, 0.0  ;;  %v613_v49 = vmul.f32 (!%p3636_p8), %v4456_v1, %v609_v46  ;;  %v614_v50 = vmul.f32 (!%p3636_p8), %v4456_v1, %v610_v47  ;;  %v612_v51 = vld [vmem:[%s4513_s30 + $0x18] sm:$0xff] (!%p3636_p8) }
  0x1e   : > { %v573_v35 = vpack.c.bf16 %v567_v29, %v566_v27  ;;  %v574_v36 = vpack.c.bf16 %v569_v31, %v568_v30  ;;  %v571_v37 = vmax.f32 %v563_v32, 0.0  ;;  %v615_v52 = vmul.f32 (!%p3636_p8), %v4456_v1, %v611_v48 }
  0x1f   : > { %v581_v38 = vrot.slane %v572_v33, 4  ;;  %608 = sbr.rel (%p3636_p8) target bundleno = 43 (0x2b), region = 72  ;;  %v616_v53 = vmul.f32 (!%p3636_p8), %v4456_v1, %v612_v51  ;;  %v617_v54 = vadd.f32 (!%p3636_p8), %v4469_v2, %v613_v49  ;;  %v618_v55 = vadd.f32 (!%p3636_p8), %v4469_v2, %v614_v50 }
  0x20   : > { %v582_v39 = vrot.slane %v573_v35, 4  ;;  %v584_v40 = vrot.slane %v574_v36, 4  ;;  %v575_v41 = vpack.c.bf16 %v571_v37, %v570_v34  ;;  %v619_v56 = vadd.f32 (!%p3636_p8), %v4469_v2, %v615_v52 }
  0x21   : > { %593 = vst.msk [vmem:[#allocation2 + $0x10] sm:$0xf0] %vm534_vm1, %v581_v38  ;;  %v620_v57 = vadd.f32 (!%p3636_p8), %v4469_v2, %v616_v53  ;;  %v621_v58 = vmax.f32 (!%p3636_p8), %v617_v54, 0.0  ;;  %v622_v59 = vmax.f32 (!%p3636_p8), %v618_v55, 0.0 }
  0x22   : > { %v583_v42 = vsel %vm580_vm3, %v581_v38, %v582_v39  ;;  %v585_v43 = vsel %vm580_vm3, %v582_v39, %v584_v40  ;;  %v586_v44 = vrot.slane %v575_v41, 4  ;;  %v623_v60 = vmax.f32 (!%p3636_p8), %v619_v56, 0.0 }
  0x23   : > { %595 = vst.msk [vmem:[#allocation2 + $0x18] sm:$0xff] %vm594_vm2, %v583_v42  ;;  %596 = vst.msk [vmem:[#allocation2 + $0x20] sm:$0xff] %vm594_vm2, %v585_v43  ;;  %v624_v61 = vmax.f32 (!%p3636_p8), %v620_v57, 0.0  ;;  %v625_v62 = vpack.c.bf16 (!%p3636_p8), %v622_v59, %v621_v58 }
  0x24   : > { %v587_v45 = vsel %vm580_vm3, %v584_v40, %v586_v44  ;;  %598 = vst.msk [vmem:[#allocation2 + $0x30] sm:$0xf] %vm532_vm0, %v586_v44 }
  0x25   : > { %597 = vst.msk [vmem:[#allocation2 + $0x28] sm:$0xff] %vm594_vm2, %v587_v45  ;;  %v626_v63 = vpack.c.bf16 (!%p3636_p8), %v624_v61, %v623_v60  ;;  %v629_v6 = vrot.slane (!%p3636_p8), %v625_v62, 4 }
  0x27   : > { %v630_v7 = vrot.slane %v626_v63, 4  ;;  %635 = vst.msk [vmem:[#allocation2] sm:$0xf0] %vm534_vm1, %v629_v6 }
  0x29   : > { %v631_v9 = vsel %vm580_vm3, %v629_v6, %v630_v7  ;;  %637 = vst.msk [vmem:[#allocation2 + $0x10] sm:$0xf] %vm532_vm0, %v630_v7 }
  0x2a   : > { %636 = vst.msk [vmem:[#allocation2 + $0x8] sm:$0xff] %vm594_vm2, %v631_v9 }
  0x2b PF: > { %p3637_p9 = scmp.ge.s32.totalorder %s4312_s21, 3 }
  0x2c   : > { %v642_v12 = vld [vmem:[%s4518_s15] sm:$0xff] (!%p3637_p9)  ;;  %v643_v13 = vld [vmem:[%s4518_s15 + $0x8] sm:$0xff] (!%p3637_p9)  ;;  %v644_v14 = vld [vmem:[%s4518_s15 + $0x10] sm:$0xff] (!%p3637_p9) }
  0x2d   : > { %641 = sbr.rel (%p3637_p9) target bundleno = 58 (0x3a), region = 76  ;;  %v646_v17 = vmul.f32 (!%p3637_p9), %v4456_v1, %v642_v12  ;;  %v647_v18 = vmul.f32 (!%p3637_p9), %v4456_v1, %v643_v13  ;;  %v645_v19 = vld [vmem:[%s4518_s15 + $0x18] sm:$0xff] (!%p3637_p9)  ;;  %v648_v20 = vmul.f32 (!%p3637_p9), %v4456_v1, %v644_v14 }
  0x2e   : > { %v649_v21 = vmul.f32 (!%p3637_p9), %v4456_v1, %v645_v19 }
  0x2f   : > { %v650_v22 = vadd.f32 (!%p3637_p9), %v4469_v2, %v646_v17  ;;  %v651_v23 = vadd.f32 (!%p3637_p9), %v4469_v2, %v647_v18  ;;  %v652_v24 = vadd.f32 (!%p3637_p9), %v4469_v2, %v648_v20 }
  0x30   : > { %v653_v25 = vadd.f32 (!%p3637_p9), %v4469_v2, %v649_v21 }
  0x31   : > { %v654_v26 = vmax.f32 (!%p3637_p9), %v650_v22, 0.0  ;;  %v655_v27 = vmax.f32 (!%p3637_p9), %v651_v23, 0.0  ;;  %v656_v28 = vmax.f32 (!%p3637_p9), %v652_v24, 0.0 }
  0x32   : > { %v657_v29 = vmax.f32 (!%p3637_p9), %v653_v25, 0.0 }
  0x33   : > { %v658_v30 = vpack.c.bf16 (!%p3637_p9), %v655_v27, %v654_v26 }
  0x34   : > { %v659_v31 = vpack.c.bf16 %v657_v29, %v656_v28 }
  0x35   : > { %v662_v32 = vrot.slane %v658_v30, 4 }
  0x36   : > { %v663_v33 = vrot.slane %v659_v31, 4 }
  0x37   : > { %668 = vst.msk [vmem:[#allocation2 + $0x30] sm:$0xf0] %vm534_vm1, %v662_v32 }
  0x38   : > { %v664_v1 = vsel %vm580_vm3, %v662_v32, %v663_v33  ;;  %670 = vst.msk [vmem:[#allocation2 + $0x40] sm:$0xf] %vm532_vm0, %v663_v33 }
  0x39   : > { %669 = vst.msk [vmem:[#allocation2 + $0x38] sm:$0xff] %vm594_vm2, %v664_v1 }
  0x3a PF: > { %v3650_v2 = vld [vmem:[%s5340_s7 + $0x6] sm:$0x3]  ;;  %vm994_vm4 = vcmask 1041408   ;;  %v3671_v34 = vld [vmem:[%s5340_s7 + $0x8] sm:$0x3]  ;;  %v4570_v35 = vld [vmem:[#allocation2 + $0x10] sm:$0xff] }
  0x3b   : > { %4227 = vmatprep.subr.msk.bf16.mxu0 %vm994_vm4, %v3650_v2  ;;  %v996_v36 = vsel %vm994_vm4, %v3650_v2, 0  ;;  %4230 = vmatprep.subr.msk.bf16.mxu1 %vm994_vm4, %v3671_v34  ;;  %v1441_v37 = vsel %vm994_vm4, %v3671_v34, 0  ;;  %v908_v38 = vld [vmem:[#allocation2 + $0x8] sm:$0xf8]  ;;  %v923_v41 = vshrl.u32 %v4570_v35, 16  ;;  %v926_v42 = vshll.u32 %v4570_v35, 16 }
  0x3c   : > { %3882 = vmatpush3.bf16.msra.mxu0 %v996_v36  ;;  %3924 = vmatpush3.bf16.msra.mxu1 %v1441_v37  ;;  %v915_v39 = vshrl.u32 %v908_v38, 16  ;;  %v918_v40 = vshll.u32 %v908_v38, 16  ;;  %v907_v43 = vld [vmem:[%s5340_s7] sm:$0x3]  ;;  %v4582_v44 = vld [vmem:[#allocation2 + $0x8] sm:$0xf0] }
  0x3d   : > { %4228 = vmatprep.subr.msk.bf16.mxu0 %vm994_vm4, %v907_v43  ;;  %v4585_v45 = vrot.slane %v4570_v35, 4  ;;  %v4587_v46 = vld [vmem:[#allocation2 + $0x18] sm:$0xff]  ;;  %v925_v49 = vrot.slane %v923_v41, 3  ;;  %v928_v50 = vrot.slane %v926_v42, 4  ;;  %vm913_vm5 = vsmask.f32 4352 }
  0x3e   : > { %v917_v47 = vrot.slane %v915_v39, 3  ;;  %v920_v48 = vrot.slane %v918_v40, 4  ;;  %v1409_v51 = vrot.slane %v4582_v44, 4  ;;  %v932_v52 = vshrl.u32 %v4587_v46, 16  ;;  %v4595_v53 = vld [vmem:[#allocation2 + $0x20] sm:$0xff]  ;;  %v4603_v58 = vld [vmem:[#allocation2 + $0x28] sm:$0xff] }
  0x3f   : > { %v4597_v55 = vor.u32 %v928_v50, %v925_v49  ;;  %v935_v56 = vshll.u32 %v4587_v46, 16  ;;  %v4601_v57 = vrot.slane %v4587_v46, 4  ;;  %v3670_v59 = vld [vmem:[%s5340_s7 + $0x2] sm:$0x3]  ;;  %v1116_v62 = vsel %vm994_vm4, %v907_v43, 0  ;;  %v4613_v63 = vld [vmem:[#allocation2 + $0x30] sm:$0xff] }
  0x40   : > { %v921_v54 = vor.u32 %v920_v48, %v917_v47  ;;  %v1411_v60 = vsel %vm580_vm3, %v1409_v51, %v4585_v45  ;;  %v934_v61 = vrot.slane %v932_v52, 3  ;;  %4231 = vmatprep.subr.msk.bf16.mxu1 %vm994_vm4, %v3670_v59  ;;  %v941_v12 = vshrl.u32 %v4595_v53, 16  ;;  %v910_v23 = vld [vmem:[#allocation2 + $0x38] sm:$0xf]  ;;  %v3663_v31 = vld [vmem:[%s5340_s7 + $0xc] sm:$0x3] }
  0x41   : > { %3925 = vmatprep.mubr.msk.bf16.mxu1 %vm594_vm2, %v1411_v60  ;;  %v937_v7 = vrot.slane %v935_v56, 4  ;;  %v4624_v9 = vsel %vm580_vm3, %v4585_v45, %v4601_v57  ;;  %v944_v13 = vshll.u32 %v4595_v53, 16  ;;  %v1414_v14 = vrot.slane %v4595_v53, 4  ;;  %v900_v34 = vld [vmem:[#allocation2] sm:$0xf8]  ;;  %v4682_v43 = vld [vmem:[#allocation2 + $0x8] sm:$0xff] }
  0x42   : > { %v930_v6 = vsel %vm913_vm5, %v921_v54, %v4597_v55  ;;  %3926 = vmatmul.mubr.msk.bf16.vlgmr.msra.gmra.mrb[0].mxu1 %vm594_vm2, %v4624_v9  ;;  %v950_v17 = vshrl.u32 %v4603_v58, 16  ;;  %v953_v18 = vshll.u32 %v4603_v58, 16  ;;  %v943_v20 = vrot.slane %v941_v12, 3  ;;  %v3684_v36 = vld [vmem:[%s5340_s7 + $0xe] sm:$0x3]  ;;  %p3714_p10 = scmp.ne.s32.totalorder %s4312_s21, 0 }
  0x43   : > { %3883 = vmatprep.mubr.msk.bf16.mxu0 %vm594_vm2, %v930_v6  ;;  %v4634_v19 = vor.u32 %v937_v7, %v934_v61  ;;  %v4639_v21 = vrot.slane %v4603_v58, 4  ;;  %v959_v22 = vshrl.u32 %v4613_v63, 16  ;;  %v946_v24 = vrot.slane %v944_v13, 4  ;;  %v4694_v49 = vld [vmem:[#allocation2] sm:$0xf0] }
  0x44   : > { %v4646_v25 = vsel %vm580_vm3, %v4601_v57, %v1414_v14  ;;  %v952_v26 = vrot.slane %v950_v17, 3  ;;  %v955_v27 = vrot.slane %v953_v18, 4  ;;  %v962_v30 = vshll.u32 %v4613_v63, 16  ;;  %v1626_v46 = vld [vmem:[#allocation2 + $0x10] sm:$0xf0] }
  0x45   : > { %v4655_v28 = vsel %vm913_vm5, %v4597_v55, %v4634_v19  ;;  %3929 = vmatprep.mubr.msk.bf16.mxu1 %vm594_vm2, %v4646_v25  ;;  %v961_v29 = vrot.slane %v959_v22, 3  ;;  %v947_v32 = vor.u32 %v946_v24, %v943_v20  ;;  %v4670_v1 = vrot.slane %v4613_v63, 4 }
  0x46   : > { %3884 = vmatmul.mubr.msk.bf16.vlgmr.msra.gmra.mrb[0].mxu0 %vm594_vm2, %v4655_v28  ;;  %v4667_v33 = vor.u32 %v955_v27, %v952_v26  ;;  %v968_v2 = vshrl.u32 %v910_v23, 16  ;;  %v4677_v37 = vsel %vm580_vm3, %v1414_v14, %v4639_v21  ;;  %v964_v38 = vrot.slane %v962_v30, 4 }
  0x47   : > { %3896 = vmatpush3.bf16.msra.mxu0 %v1116_v62  ;;  %v971_v39 = vshll.u32 %v910_v23, 16  ;;  %v1543_v40 = vsel %vm994_vm4, %v3670_v59, 0  ;;  %v4686_v47 = vsel %vm913_vm5, %v4634_v19, %v947_v32  ;;  %v4691_v48 = vsel %vm580_vm3, %v4639_v21, %v4670_v1 }
  0x48   : > { %3938 = vmatpush3.bf16.msra.mxu1 %v1543_v40  ;;  %4229 = vmatprep.subr.msk.bf16.mxu0 %vm994_vm4, %v3663_v31  ;;  %v4700_v50 = vsel %vm913_vm5, %v947_v32, %v4667_v33  ;;  %v4702_v51 = vor.u32 %v964_v38, %v961_v29  ;;  %v1420_v54 = vrot.slane %v910_v23, 4  ;;  %v1080_v59 = vshrl.u32 %v900_v34, 16 }
  0x49   : > { %3887 = vmatprep.mubr.msk.bf16.mxu0 %vm594_vm2, %v4686_v47  ;;  %4232 = vmatprep.subr.msk.bf16.mxu1 %vm994_vm4, %v3684_v36  ;;  %v970_v60 = vrot.slane %v968_v2, 3  ;;  %v1083_v61 = vshll.u32 %v900_v34, 16  ;;  %v1088_v62 = vshrl.u32 %v4682_v43, 16  ;;  %v5350_v6 = vshll.u32 %v4682_v43, 16 }
  0x4a   : > { %3930 = vmatmul.mubr.msk.bf16.gmra.mrb[4].mxu1 %vm594_vm2, %v4677_v37  ;;  %v4712_v7 = vsel %vm913_vm5, %v4667_v33, %v4702_v51  ;;  %v973_v14 = vrot.slane %v971_v39, 4  ;;  %v1082_v20 = vrot.slane %v1080_v59, 3  ;;  %v1527_v23 = vrot.slane %v4694_v49, 4 }
  0x4b   : > { %3933 = vmatprep.mubr.msk.bf16.mxu1 %vm594_vm2, %v4691_v48  ;;  %v1085_v24 = vrot.slane %v1083_v61, 4  ;;  %v1090_v26 = vrot.slane %v1088_v62, 3  ;;  %v1093_v27 = vrot.slane %v5350_v6, 4  ;;  %v1528_v29 = vrot.slane %v4682_v43, 4 }
  0x4c   : > { %v1783_v32 = vshrl.u32 %v4582_v44, 16  ;;  %v974_v2 = vor.u32 %v973_v14, %v970_v60  ;;  %v1421_v34 = vsel %vm580_vm3, %v4670_v1, %v1420_v54  ;;  %v1786_v38 = vshll.u32 %v4582_v44, 16  ;;  %v4736_v14 = vld [vmem:[#allocation2 + $0x30] sm:$0xf] }
  0x4d   : > { %v1086_v39 = vor.u32 %v1085_v24, %v1082_v20  ;;  %v1094_v40 = vor.u32 %v1093_v27, %v1090_v26  ;;  %v1529_v59 = vsel %vm580_vm3, %v1527_v23, %v1528_v29  ;;  %v1922_v44 = vshrl.u32 %v4694_v49, 16 }
  0x4e   : > { %3888 = vmatmul.mubr.msk.bf16.gmra.mrb[4].mxu0 %vm594_vm2, %v4700_v50  ;;  %v975_v61 = vsel %vm913_vm5, %v4702_v51, %v974_v2  ;;  %v1785_v0 = vrot.slane %v1783_v32, 4  ;;  %v1788_v6 = vrot.slane %v1786_v38, 5  ;;  %v1925_v54 = vshll.u32 %v4694_v49, 16 }
  0x4f   : > { %3891 = vmatprep.mubr.msk.bf16.mxu0 %vm594_vm2, %v4712_v7  ;;  %v1095_v60 = vsel %vm913_vm5, %v1086_v39, %v1094_v40  ;;  %v1289_v20 = vsel %vm994_vm4, %v3663_v31, 0  ;;  %v1530_v23 = vsel %vm580_vm3, %v1528_v29, %v4585_v45  ;;  %v1098_v24 = vshrl.u32 %v4736_v14, 16  ;;  %v4779_v29 = vld [vmem:[#allocation2 + $0x38] sm:$0xff] }
  0x50   : > { %v1668_v26 = vsel %vm994_vm4, %v3684_v36, 0  ;;  %v1789_v27 = vor.u32 %v1788_v6, %v1785_v0  ;;  %v1790_v32 = vrot.slane %v923_v41, 4  ;;  %v1791_v2 = vrot.slane %v926_v42, 5  ;;  %v1199_v41 = vld [vmem:[#allocation2 + $0x10] sm:$0xf8] }
  0x51   : > { %v1794_v49 = vrot.slane %v932_v52, 4  ;;  %vm1781_vm6 = vsmask.f32 3328  ;;  %v1795_v45 = vrot.slane %v935_v56, 5  ;;  %v1798_v31 = vrot.slane %v941_v12, 4 }
  0x52   : > { %3934 = vmatmul.mubr.msk.bf16.gmra.mrb[8].mxu1 %vm594_vm2, %v1421_v34  ;;  %v1101_v34 = vshll.u32 %v4736_v14, 16  ;;  %v1096_v0 = vsel %vm913_vm5, %v1094_v40, %v4597_v55  ;;  %v1792_v35 = vor.u32 %v1791_v2, %v1790_v32  ;;  %v1799_v42 = vrot.slane %v944_v13, 5 }
  0x53   : > { %3939 = vmatprep.mubr.msk.bf16.mxu1 %vm594_vm2, %v1529_v59  ;;  %v1802_v52 = vrot.slane %v950_v17, 4  ;;  %v1796_v56 = vor.u32 %v1795_v45, %v1794_v49  ;;  %v1803_v12 = vrot.slane %v953_v18, 5  ;;  %v1806_v55 = vrot.slane %v959_v22, 4  ;;  %v2036_v49 = vld [vmem:[#allocation2 + $0x40] sm:$0x1f] }
  0x54   : > { %v1807_v36 = vrot.slane %v962_v30, 5  ;;  %v2040_v53 = vshrl.u32 %v1626_v46, 16  ;;  %v2043_v13 = vshll.u32 %v1626_v46, 16  ;;  %v4774_v6 = vsel %vm1781_vm6, %v1789_v27, %v1792_v35 }
  0x55   : > { %v1800_v17 = vor.u32 %v1799_v42, %v1798_v31  ;;  %v4782_v58 = vsel %vm1781_vm6, %v1792_v35, %v1796_v56  ;;  %v4784_v18 = vor.u32 %v1803_v12, %v1802_v52  ;;  %v1924_v63 = vrot.slane %v1922_v44, 4 }
  0x56   : > { %3892 = vmatmul.mubr.msk.bf16.gmra.mrb[8].mxu0 %vm594_vm2, %v975_v61  ;;  %v4786_v22 = vor.u32 %v1807_v36, %v1806_v55  ;;  %v1531_v30 = vrot.slane %v4736_v14, 4  ;;  %v1209_v38 = vshrl.u32 %v1199_v41, 16  ;;  %v1927_v40 = vrot.slane %v1925_v54, 5 }
  0x57   : > { %3897 = vmatprep.mubr.msk.bf16.mxu0 %vm594_vm2, %v1095_v60  ;;  %v4791_v39 = vsel %vm1781_vm6, %v1796_v56, %v1800_v17  ;;  %v4797_v59 = vsel %vm1781_vm6, %v1800_v17, %v4784_v18  ;;  %v1929_v60 = vrot.slane %v1088_v62, 4  ;;  %v5355_v14 = vshll.u32 %v4682_v43, 16 }
  0x58   : > { %v4802_v61 = vsel %vm1781_vm6, %v4784_v18, %v4786_v22  ;;  %v1212_v54 = vshll.u32 %v1199_v41, 16  ;;  %v2042_v32 = vrot.slane %v2040_v53, 4  ;;  %v2045_v2 = vrot.slane %v2043_v13, 5 }
  0x59   : > { %v1930_v44 = vrot.slane %v5355_v14, 5  ;;  %v1103_v62 = vrot.slane %v1101_v34, 4  ;;  %v1211_v45 = vrot.slane %v1209_v38, 3  ;;  %v2068_v55 = vshrl.u32 %v2036_v49, 16 }
  0x5a   : > { %3940 = vmatmul.mubr.msk.bf16.vlgmr.msra.gmra.mrb[0].mxu1 %vm594_vm2, %v1530_v23  ;;  %v1928_v23 = vor.u32 %v1927_v40, %v1924_v63  ;;  %v2046_v42 = vor.u32 %v2045_v2, %v2042_v32  ;;  %v1214_v52 = vrot.slane %v1212_v54, 4  ;;  %v2071_v36 = vshll.u32 %v2036_v49, 16 }
  0x5b   : > { %3943 = vmatprep.mubr.msk.bf16.mxu1 %vm594_vm2, %v4624_v9  ;;  %3952 = vmatpush3.bf16.msra.mxu1 %v1668_v26  ;;  %v3692_v9 = vld [vmem:[%s5340_s7 + $0xa] sm:$0x3]  ;;  %v1100_v26 = vrot.slane %v1098_v24, 3  ;;  %v1931_v27 = vor.u32 %v1930_v44, %v1929_v60  ;;  %v2070_v53 = vrot.slane %v2068_v55, 4  ;;  %v1532_v17 = vsel %vm580_vm3, %v4639_v21, %v1531_v30  ;;  %v1205_v44 = vld [vmem:[#allocation2 + $0x40] sm:$0xf] }
  0x5c   : > { %v4822_v34 = vsel %vm1781_vm6, %v2046_v42, %v1796_v56  ;;  %v2073_v13 = vrot.slane %v2071_v36, 5  ;;  %v1215_v63 = vor.u32 %v1214_v52, %v1211_v45  ;;  %v1775_v45 = vld [vmem:[#allocation2 + $0x30] sm:$0x1f]  ;;  %vm2272_vm7 = vcmask 64516  }
  0x5d   : > { %v4816_v41 = vsel %vm1781_vm6, %v1928_v23, %v1931_v27  ;;  %v4819_v24 = vsel %vm1781_vm6, %v1931_v27, %v1792_v35  ;;  %v1104_v35 = vor.u32 %v1103_v62, %v1100_v26  ;;  %vm2270_vm8 = vcmask 60416  }
  0x5e   : > { %3898 = vmatmul.mubr.msk.bf16.vlgmr.msra.gmra.mrb[0].mxu0 %vm594_vm2, %v1096_v0  ;;  %v1636_v0 = vrot.slane %v1626_v46, 4  ;;  %v2074_v38 = vor.u32 %v2073_v13, %v2070_v53  ;;  %v1224_v14 = vsel %vm913_vm5, %v1215_v63, %v4634_v19  ;;  %v3691_v19 = vld [vmem:[%s5340_s7 + $0x4] sm:$0x3] }
  0x5f   : > { %3910 = vmatpush3.bf16.msra.mxu0 %v1289_v20  ;;  %3901 = vmatprep.mubr.msk.bf16.mxu0 %vm594_vm2, %v4655_v28  ;;  %v1253_v28 = vshrl.u32 %v4779_v29, 16  ;;  %v1256_v20 = vshll.u32 %v4779_v29, 16  ;;  %v1105_v60 = vsel %vm913_vm5, %v4667_v33, %v1104_v35  ;;  %v1645_v33 = vrot.slane %v4779_v29, 4 }
  0x60   : > { %4233 = vmatprep.subr.msk.bf16.mxu0 %vm994_vm4, %v3692_v9  ;;  %v1638_v56 = vsel %vm580_vm3, %v1636_v0, %v4601_v57  ;;  %v1838_v57 = vsel %vm994_vm4, %v3692_v9, 0  ;;  %v1953_v23 = vsel %vm994_vm4, %v3691_v19, 0 }
  0x61   : > { %v2063_v43 = vrot.slane %v1253_v28, 4  ;;  %v2064_v31 = vrot.slane %v1256_v20, 5  ;;  %v1255_v21 = vrot.slane %v1253_v28, 3  ;;  %v1258_v30 = vrot.slane %v1256_v20, 4 }
  0x62   : > { %3944 = vmatmul.mubr.msk.bf16.gmra.mrb[4].mxu1 %vm594_vm2, %v4646_v25  ;;  %v1646_v9 = vsel %vm580_vm3, %v4670_v1, %v1645_v33 }
  0x63   : > { %3947 = vmatprep.mubr.msk.bf16.mxu1 %vm594_vm2, %v4677_v37  ;;  %v2065_v12 = vor.u32 %v2064_v31, %v2063_v43  ;;  %v1259_v54 = vor.u32 %v1258_v30, %v1255_v21  ;;  %v1935_v43 = vshrl.u32 %v1775_v45, 16  ;;  %v1938_v31 = vshll.u32 %v1775_v45, 16 }
  0x65   : > { %v4828_v46 = vsel %vm1781_vm6, %v4786_v22, %v2065_v12  ;;  %v4838_v40 = vsel %vm1781_vm6, %v2065_v12, %v2074_v38  ;;  %v1260_v20 = vsel %vm913_vm5, %v4702_v51, %v1259_v54  ;;  %v1778_v51 = vld [vmem:[#allocation2 + $0x38] sm:$0x1f]  ;;  %v1937_v0 = vrot.slane %v1935_v43, 4 }
  0x66   : > { %3902 = vmatmul.mubr.msk.bf16.gmra.mrb[4].mxu0 %vm594_vm2, %v4686_v47  ;;  %v1811_v26 = vshrl.u32 %v1778_v51, 16  ;;  %v1814_v27 = vshll.u32 %v1778_v51, 16  ;;  %v1940_v42 = vrot.slane %v1938_v31, 5 }
  0x67   : > { %3905 = vmatprep.mubr.msk.bf16.mxu0 %vm594_vm2, %v4700_v50 }
  0x68   : > { %v1813_v32 = vrot.slane %v1811_v26, 4 }
  0x6a   : > { %3948 = vmatmul.mubr.msk.bf16.gmra.mrb[8].mxu1 %vm594_vm2, %v1532_v17 }
  0x6b   : > { %3953 = vmatprep.mubr.msk.bf16.mxu1 %vm594_vm2, %v1638_v56 }
  0x6e   : > { %3906 = vmatmul.mubr.msk.bf16.gmra.mrb[8].mxu0 %vm594_vm2, %v1105_v60 }
  0x6f   : > { %3911 = vmatprep.mubr.msk.bf16.mxu0 %vm594_vm2, %v1224_v14 }
  0x72   : > { %3954 = vmatmul.mubr.msk.bf16.vlgmr.msra.gmra.mrb[0].mxu1 %vm594_vm2, %v4646_v25  ;;  %v1262_v25 = vshrl.u32 %v1205_v44, 16 }
  0x73   : > { %3957 = vmatprep.mubr.msk.bf16.mxu1 %vm594_vm2, %v4677_v37  ;;  %v1265_v37 = vshll.u32 %v1205_v44, 16 }
  0x74   : > { %v1264_v29 = vrot.slane %v1262_v25, 3 }
  0x75   : > { %v1267_v28 = vrot.slane %v1265_v37, 4 }
  0x76   : > { %3912 = vmatmul.mubr.msk.bf16.vlgmr.msra.gmra.mrb[0].mxu0 %vm594_vm2, %v4686_v47  ;;  %v1647_v47 = vrot.slane %v1205_v44, 4 }
  0x77   : > { %3966 = vmatpush3.bf16.msra.mxu0 %v1838_v57  ;;  %3915 = vmatprep.mubr.msk.bf16.mxu0 %vm594_vm2, %v4700_v50  ;;  %v1268_v50 = vor.u32 %v1267_v28, %v1264_v29 }
  0x78   : > { %4234 = vmatprep.subr.msk.bf16.mxu0 %vm994_vm4, %v3691_v19  ;;  %v1648_v1 = vsel %vm580_vm3, %v1645_v33, %v1647_v47 }
  0x7a   : > { %3958 = vmatmul.mubr.msk.bf16.gmra.mrb[4].mxu1 %vm594_vm2, %v4691_v48  ;;  %v1269_v48 = vsel %vm913_vm5, %v1259_v54, %v1268_v50 }
  0x7b   : > { %3961 = vmatprep.mubr.msk.bf16.mxu1 %vm594_vm2, %v1646_v9 }
  0x7e   : > { %3916 = vmatmul.mubr.msk.bf16.gmra.mrb[4].mxu0 %vm594_vm2, %v4712_v7  ;;  %v3705_v7 = vld [vmem:[%s5340_s7 + $0x10] sm:$0x3] }
  0x7f   : > { %3919 = vmatprep.mubr.msk.bf16.mxu0 %vm594_vm2, %v1260_v20  ;;  %v2095_v62 = vsel %vm994_vm4, %v3705_v7, 0 }
  0x82   : > { %3962 = vmatmul.mubr.msk.bf16.gmra.mrb[8].mxu1 %vm594_vm2, %v1648_v1 }
  0x86   : > { %3920 = vmatmul.mubr.msk.bf16.gmra.mrb[8].mxu0 %vm594_vm2, %v1269_v48 }
  0x87   : > { %3967 = vmatprep.mubr.msk.bf16.mxu0 %vm594_vm2, %v4774_v6  ;;  %v1816_v6 = vrot.slane %v1814_v27, 5 }
  0x89   : > { %v1817_v2 = vor.u32 %v1816_v6, %v1813_v32 }
  0x8b   : > { %v1818_v49 = vsel %vm1781_vm6, %v4786_v22, %v1817_v2  ;;  %v1941_v22 = vor.u32 %v1940_v42, %v1937_v0 }
  0x8e   : > { %3968 = vmatmul.mubr.msk.bf16.vlgmr.msra.gmra.mrb[12].mxu0 %vm594_vm2, %v4782_v58 }
  0x8f   : > { %3980 = vmatpush3.bf16.msra.mxu0 %v1953_v23  ;;  %3971 = vmatprep.mubr.msk.bf16.mxu0 %vm594_vm2, %v4791_v39 }
  0x90   : > { %4235 = vmatprep.subr.msk.bf16.mxu0 %vm994_vm4, %v3705_v7 }
  0x96   : > { %3972 = vmatmul.mubr.msk.bf16.gmra.mrb[16].mxu0 %vm594_vm2, %v4797_v59 }
  0x97   : > { %3975 = vmatprep.mubr.msk.bf16.mxu0 %vm594_vm2, %v4802_v61 }
  0x9e   : > { %3976 = vmatmul.mubr.msk.bf16.gmra.mrb[20].mxu0 %vm594_vm2, %v1818_v49 }
  0x9f   : > { %3981 = vmatprep.mubr.msk.bf16.mxu0 %vm594_vm2, %v4816_v41  ;;  %v1942_v41 = vsel %vm1781_vm6, %v4784_v18, %v1941_v22  ;;  %v671_v18 = vlaneseq }
  0xa6   : > { %3982 = vmatmul.mubr.msk.bf16.vlgmr.msra.gmra.mrb[12].mxu0 %vm594_vm2, %v4819_v24 }
  0xa7   : > { %3994 = vmatpush3.bf16.msra.mxu0 %v2095_v62  ;;  %3985 = vmatprep.mubr.msk.bf16.mxu0 %vm594_vm2, %v4782_v58  ;;  %v5356_v58 = vmov 0  }
  0xa8   : > { %2273 = vst.msk [vmem:[#allocation3 + $0x30] sm:$0xf0] %vm2272_vm7, %v5356_v58 }
  0xa9   : > { %2271 = vst.msk [vmem:[#allocation3] sm:$0xf] %vm2270_vm8, %v5356_v58 }
  0xae   : > { %3986 = vmatmul.mubr.msk.bf16.gmra.mrb[16].mxu0 %vm594_vm2, %v4791_v39 }
  0xaf   : > { %3989 = vmatprep.mubr.msk.bf16.mxu0 %vm594_vm2, %v4797_v59 }
  0xb6   : > { %3990 = vmatmul.mubr.msk.bf16.gmra.mrb[20].mxu0 %vm594_vm2, %v1942_v41 }
  0xb7   : > { %3995 = vmatprep.mubr.msk.bf16.mxu0 %vm594_vm2, %v4822_v34  ;;  %v4331_v34 = vmov 0.0  }
  0xbe   : > { %3996 = vmatmul.mubr.msk.bf16.vlgmr.msra.gmra.mrb[12].mxu0 %vm594_vm2, %v4791_v39  ;;  %v4923_v39 = vshrl.u32 %v671_v18, 7 }
  0xbf   : > { %3999 = vmatprep.mubr.msk.bf16.mxu0 %vm594_vm2, %v4797_v59 }
  0xc0   : > { %v674_v59 = vadd.s32 16, %v4923_v39  ;;  %v688_v24 = vand.u32 15, %v4923_v39  ;;  %v678_v52 = vadd.s32 48, %v4923_v39  ;;  %v676_v55 = vadd.s32 32, %v4923_v39 }
  0xc1   : > { %v682_v33 = vadd.s32 80, %v4923_v39  ;;  %v680_v37 = vadd.s32 64, %v4923_v39 }
  0xc2   : > { %vm828_vm10 = vcmp.gt.s32.totalorder %v688_v24, 0  ;;  %v730_v17 = vand.u32 15, %v678_v52  ;;  %v716_v56 = vand.u32 15, %v676_v55  ;;  %v675_v55 = vadd.s32 24, %v4923_v39 }
  0xc3   : > { %v4933_v13 = vsel %vm828_vm10, 1.0, %v4331_v34  ;;  %v758_v20 = vand.u32 15, %v682_v33  ;;  %v744_v1 = vand.u32 15, %v680_v37 }
  0xc4   : > { %vm834_vm11 = vcmp.gt.s32.totalorder %v730_v17, 0  ;;  %vm832_vm12 = vcmp.gt.s32.totalorder %v716_v56, 0  ;;  %v679_v17 = vadd.s32 56, %v4923_v39 }
  0xc5   : > { %v4944_v9 = vsel %vm834_vm11, 1.0, %v4331_v34  ;;  %v4947_v28 = vsel %vm832_vm12, 1.0, %v4331_v34  ;;  %vm838_vm13 = vcmp.gt.s32.totalorder %v758_v20, 0  ;;  %vm836_vm14 = vcmp.gt.s32.totalorder %v744_v1, 0 }
  0xc6   : > { %4000 = vmatmul.mubr.msk.bf16.gmra.mrb[16].mxu0 %vm594_vm2, %v4802_v61  ;;  %v702_v61 = vand.u32 15, %v674_v59  ;;  %v3643_v45 = vsel %vm838_vm13, 1.0, %v4331_v34  ;;  %v3642_v31 = vsel %vm836_vm14, 1.0, %v4331_v34  ;;  %v737_v33 = vand.u32 15, %v679_v17 }
  0xc7   : > { %4003 = vmatprep.mubr.msk.bf16.mxu0 %vm594_vm2, %v4828_v46  ;;  %vm2299_vm12 = vcmask 64512  }
  0xc8   : > { %vm830_vm9 = vcmp.gt.s32.totalorder %v702_v61, 0  ;;  %vm871_vm1 = vcmp.lt.s32.totalorder %v737_v33, 15 }
  0xc9   : > { %v4930_v46 = vsel %vm830_vm9, 1.0, %v4331_v34 }
  0xce   : > { %4004 = vmatmul.mubr.msk.bf16.gmra.mrb[20].mxu0 %vm594_vm2, %v4838_v40 }
 0x145   : > { %v3955_v12 = vpop.f32.mrb[0].mxu1 }
 0x146   : > { %v1704_v36 = vpop.f32.mrb[1].mxu1 }
 0x147   : > { %v3956_v53 = vpop.f32.mrb[2].mxu1 }
 0x148   : > { %v1707_v35 = vpop.f32.mrb[3].mxu1 }
 0x149   : > { %v3913_v63 = vpop.f32.mrb[0].mxu0 }
 0x14a   : > { %v1386_v38 = vmul.f32 %v3913_v63, %v4930_v46  ;;  %v1325_v40 = vpop.f32.mrb[1].mxu0  ;;  %v677_v63 = vadd.s32 40, %v4923_v39 }
 0x14b   : > { %v1384_v60 = vmul.f32 %v4933_v13, %v1325_v40  ;;  %v3914_v14 = vpop.f32.mrb[2].mxu0 }
 0x14c   : > { %v1765_v57 = vadd.f32 %v3955_v12, %v1386_v38  ;;  %v4937_v21 = vadd.f32 %v3956_v53, %v3914_v14  ;;  %v1328_v30 = vpop.f32.mrb[3].mxu0  ;;  %v709_v53 = vand.u32 15, %v675_v55  ;;  %v4972_v38 = vld [vmem:[%s5338_s5] ss:$0 sm:$0xff] }
 0x14d   : > { %v1763_v44 = vadd.f32 %v1704_v36, %v1384_v60  ;;  %v4940_v19 = vadd.f32 %v1707_v35, %v1328_v30  ;;  %v3959_v25 = vpop.f32.mrb[4].mxu1  ;;  %v673_v36 = vadd.s32 8, %v4923_v39 }
 0x14e   : > { %v1720_v54 = vpop.f32.mrb[5].mxu1  ;;  %vm867_vm15 = vcmp.lt.s32.totalorder %v709_v53, 15 }
 0x14f   : > { %v3960_v29 = vpop.f32.mrb[6].mxu1  ;;  %v695_v35 = vand.u32 15, %v673_v36  ;;  %v4975_v40 = vsel %vm867_vm15, 1.0, %v4331_v34 }
 0x150   : > { %v1723_v47 = vpop.f32.mrb[7].mxu1 }
 0x151   : > { %v3917_v50 = vpop.f32.mrb[4].mxu0  ;;  %vm865_vm0 = vcmp.lt.s32.totalorder %v695_v35, 15 }
 0x152   : > { %v1390_v48 = vmul.f32 %v3917_v50, %v4944_v9  ;;  %v1341_v23 = vpop.f32.mrb[5].mxu0  ;;  %v4978_v30 = vsel %vm865_vm0, 1.0, %v4331_v34  ;;  %v4985_v50 = vld [vmem:[%s5339_s6] ss:$0 sm:$0xff] }
 0x153   : > { %v1388_v51 = vmul.f32 %v4947_v28, %v1341_v23  ;;  %v3918_v7 = vpop.f32.mrb[6].mxu0 }
 0x154   : > { %v1769_v26 = vadd.f32 %v3959_v25, %v1390_v48  ;;  %v4951_v27 = vadd.f32 %v3960_v29, %v3918_v7  ;;  %v1344_v32 = vpop.f32.mrb[7].mxu0 }
 0x155   : > { %v1767_v6 = vadd.f32 %v1720_v54, %v1388_v51  ;;  %v4953_v2 = vadd.f32 %v1723_v47, %v1344_v32  ;;  %v3963_v49 = vpop.f32.mrb[8].mxu1  ;;  %v723_v54 = vand.u32 15, %v677_v63  ;;  %v681_v51 = vadd.s32 72, %v4923_v39 }
 0x156   : > { %v1736_v62 = vpop.f32.mrb[9].mxu1 }
 0x157   : > { %v3964_v43 = vpop.f32.mrb[10].mxu1  ;;  %vm869_vm9 = vcmp.lt.s32.totalorder %v723_v54, 15 }
 0x158   : > { %v1739_v0 = vpop.f32.mrb[11].mxu1 }
 0x159   : > { %v3921_v42 = vpop.f32.mrb[8].mxu0 }
 0x15a   : > { %v1394_v22 = vmul.f32 %v3921_v42, %v3643_v45  ;;  %v1357_v41 = vpop.f32.mrb[9].mxu0 }
 0x15b   : > { %v1392_v58 = vmul.f32 %v3642_v31, %v1357_v41  ;;  %v3922_v18 = vpop.f32.mrb[10].mxu0 }
 0x15c   : > { %v4957_v59 = vadd.f32 %v3963_v49, %v1394_v22  ;;  %v4959_v61 = vadd.f32 %v3964_v43, %v3922_v18  ;;  %v1360_v24 = vpop.f32.mrb[11].mxu0  ;;  %v4998_v43 = vsel %vm871_vm1, 1.0, %v4331_v34 }
 0x15d   : > { %v4961_v52 = vadd.f32 %v1736_v62, %v1392_v58  ;;  %v4963_v12 = vadd.f32 %v1739_v0, %v1360_v24  ;;  %v751_v58 = vand.u32 15, %v681_v51 }
 0x15f   : > { %vm873_vm11 = vcmp.lt.s32.totalorder %v751_v58, 15 }
 0x191   : > { %v3997_v56 = vpop.f32.mrb[12].mxu0 }
 0x192   : > { %v2204_v60 = vadd.f32 %v3997_v56, %v1765_v57  ;;  %v2131_v14 = vpop.f32.mrb[13].mxu0 }
 0x193   : > { %v2202_v25 = vadd.f32 %v2131_v14, %v1763_v44  ;;  %v3998_v37 = vpop.f32.mrb[14].mxu0  ;;  %v683_v44 = vadd.s32 88, %v4923_v39 }
 0x194   : > { %v2223_v29 = vmul.f32 %v4972_v38, %v2204_v60  ;;  %v2193_v47 = vmul.f32 %v3998_v37, %v4975_v40  ;;  %v2134_v20 = vpop.f32.mrb[15].mxu0 }
 0x195   : > { %v2221_v57 = vmul.f32 %v4972_v38, %v2202_v25  ;;  %v2191_v1 = vmul.f32 %v4978_v30, %v2134_v20  ;;  %v765_v39 = vand.u32 15, %v683_v44 }
 0x196   : > { %v2205_v48 = vadd.f32 %v2193_v47, %v4937_v21  ;;  %v2242_v7 = vadd.f32 %v4985_v50, %v2223_v29 }
 0x197   : > { %v2203_v23 = vadd.f32 %v2191_v1, %v4940_v19  ;;  %v2240_v49 = vadd.f32 %v4985_v50, %v2221_v57  ;;  %v5002_v19 = vsel %vm869_vm9, 1.0, %v4331_v34  ;;  %vm875_vm10 = vcmp.lt.s32.totalorder %v765_v39, 15 }
 0x198   : > { %v2224_v32 = vmul.f32 %v4972_v38, %v2205_v48  ;;  %v2254_v18 = vmax.f32 %v2242_v7, 0.0  ;;  %v3649_v57 = vsel %vm875_vm10, 1.0, %v4331_v34  ;;  %v3648_v48 = vsel %vm873_vm11, 1.0, %v4331_v34 }
 0x199   : > { %v2222_v62 = vmul.f32 %v4972_v38, %v2203_v23  ;;  %v4001_v45 = vpop.f32.mrb[16].mxu0  ;;  %v2252_v35 = vmax.f32 %v2240_v49, 0.0 }
 0x19a   : > { %v2243_v21 = vadd.f32 %v4985_v50, %v2224_v32  ;;  %v2208_v31 = vadd.f32 %v4001_v45, %v1769_v26  ;;  %v2147_v0 = vpop.f32.mrb[17].mxu0 }
 0x19b   : > { %v2241_v42 = vadd.f32 %v4985_v50, %v2222_v62  ;;  %v2206_v22 = vadd.f32 %v2147_v0, %v1767_v6  ;;  %v4002_v41 = vpop.f32.mrb[18].mxu0 }
 0x19c   : > { %v2255_v24 = vmax.f32 %v2243_v21, 0.0  ;;  %v2227_v55 = vmul.f32 %v4972_v38, %v2208_v31  ;;  %v2197_v36 = vmul.f32 %v4002_v41, %v4998_v43  ;;  %v2150_v53 = vpop.f32.mrb[19].mxu0 }
 0x19d   : > { %v2253_v17 = vmax.f32 %v2241_v42, 0.0  ;;  %v2225_v26 = vmul.f32 %v4972_v38, %v2206_v22  ;;  %v2195_v63 = vmul.f32 %v5002_v19, %v2150_v53 }
 0x19e   : > { %v2265_v56 = vpack.c.bf16 %v2255_v24, %v2254_v18  ;;  %v2209_v60 = vadd.f32 %v2197_v36, %v4951_v27  ;;  %v2246_v25 = vadd.f32 %v4985_v50, %v2227_v55 }
 0x19f   : > { %v2264_v6 = vpack.c.bf16 %v2253_v17, %v2252_v35  ;;  %v2207_v14 = vadd.f32 %v2195_v63, %v4953_v2  ;;  %v2244_v29 = vadd.f32 %v4985_v50, %v2225_v26 }
 0x1a0   : > { %v2281_v33 = vrot.slane %v2265_v56, 4  ;;  %v2228_v37 = vmul.f32 %v4972_v38, %v2209_v60  ;;  %v2258_v32 = vmax.f32 %v2246_v25, 0.0 }
 0x1a1   : > { %v2280_v54 = vrot.slane %v2264_v6, 4  ;;  %v2226_v47 = vmul.f32 %v4972_v38, %v2207_v14  ;;  %v4005_v20 = vpop.f32.mrb[20].mxu0  ;;  %v2256_v21 = vmax.f32 %v2244_v29, 0.0 }
 0x1a2   : > { %v2247_v27 = vadd.f32 %v4985_v50, %v2228_v37  ;;  %v2212_v1 = vadd.f32 %v4005_v20, %v4957_v59  ;;  %v2163_v2 = vpop.f32.mrb[21].mxu0 }
 0x1a3   : > { %v2282_v44 = vsel %vm580_vm3, %v2280_v54, %v2281_v33  ;;  %2298 = vst.msk [vmem:[#allocation3] sm:$0xf0] %vm2272_vm7, %v2280_v54  ;;  %v2245_v23 = vadd.f32 %v4985_v50, %v2226_v47  ;;  %v2210_v51 = vadd.f32 %v2163_v2, %v4961_v52  ;;  %v4006_v7 = vpop.f32.mrb[22].mxu0 }
 0x1a4   : > { %2300 = vst.msk [vmem:[#allocation3 + $0x8] sm:$0xff] %vm2299_vm12, %v2282_v44  ;;  %v2259_v49 = vmax.f32 %v2247_v27, 0.0  ;;  %v2231_v62 = vmul.f32 %v4972_v38, %v2212_v1  ;;  %v2201_v45 = vmul.f32 %v4006_v7, %v3649_v57  ;;  %v2166_v59 = vpop.f32.mrb[23].mxu0 }
 0x1a5   : > { %v2257_v31 = vmax.f32 %v2245_v23, 0.0  ;;  %v2229_v34 = vmul.f32 %v4972_v38, %v2210_v51  ;;  %v2199_v0 = vmul.f32 %v3648_v48, %v2166_v59 }
 0x1a6   : > { %v2267_v39 = vpack.c.bf16 %v2259_v49, %v2258_v32  ;;  %v2213_v42 = vadd.f32 %v2201_v45, %v4959_v61  ;;  %v2250_v58 = vadd.f32 %v4985_v50, %v2231_v62 }
 0x1a7   : > { %v2266_v22 = vpack.c.bf16 %v2257_v31, %v2256_v21  ;;  %v2211_v52 = vadd.f32 %v2199_v0, %v4963_v12  ;;  %v2248_v55 = vadd.f32 %v4985_v50, %v2229_v34 }
 0x1a8   : > { %v2285_v41 = vrot.slane %v2267_v39, 4  ;;  %v2232_v18 = vmul.f32 %v4972_v38, %v2213_v42  ;;  %v2262_v12 = vmax.f32 %v2250_v58, 0.0 }
 0x1a9   : > { %v2283_v24 = vrot.slane %v2266_v22, 4  ;;  %v2230_v36 = vmul.f32 %v4972_v38, %v2211_v52  ;;  %v2260_v63 = vmax.f32 %v2248_v55, 0.0 }
 0x1aa   : > { %v2251_v53 = vadd.f32 %v4985_v50, %v2232_v18 }
 0x1ab   : > { %v2284_v35 = vsel %vm580_vm3, %v2281_v33, %v2283_v24  ;;  %v2286_v17 = vsel %vm580_vm3, %v2283_v24, %v2285_v41  ;;  %v2249_v61 = vadd.f32 %v4985_v50, %v2230_v36  ;;  %v4332_v50 = vmov (!%p3714_p10), 0  }
 0x1ac   : > { %2301 = vst.msk [vmem:[#allocation3 + $0x10] sm:$0xff] %vm2299_vm12, %v2284_v35  ;;  %2302 = vst.msk [vmem:[#allocation3 + $0x18] sm:$0xff] %vm2299_vm12, %v2286_v17  ;;  %v2263_v26 = vmax.f32 %v2251_v53, 0.0 }
 0x1ad   : > { %v2261_v56 = vmax.f32 %v2249_v61, 0.0  ;;  %2310 = vst.msk [vmem:[#allocation3] sm:$0xf0] (!%p3714_p10), %vm2272_vm7, %v4332_v50 }
 0x1ae   : > { %v2269_v60 = vpack.c.bf16 %v2263_v26, %v2262_v12  ;;  %2309 = sbr.rel (%p3714_p10) target bundleno = 437 (0x1b5), region = 80  ;;  %2311 = vst.msk [vmem:[#allocation3 + $0x8] sm:$0xf] (!%p3714_p10), %vm2270_vm8, %v4332_v50 }
 0x1af   : > { %v2268_v6 = vpack.c.bf16 %v2261_v56, %v2260_v63 }
 0x1b0   : > { %v2289_v14 = vrot.slane %v2269_v60, 4 }
 0x1b1   : > { %v2287_v38 = vrot.slane %v2268_v6, 4 }
 0x1b2   : > { %2305 = vst.msk [vmem:[#allocation3 + $0x30] sm:$0xf] %vm2270_vm8, %v2289_v14 }
 0x1b3   : > { %v2288_v33 = vsel %vm580_vm3, %v2285_v41, %v2287_v38  ;;  %v2290_v25 = vsel %vm580_vm3, %v2287_v38, %v2289_v14 }
 0x1b4   : > { %2303 = vst.msk [vmem:[#allocation3 + $0x20] sm:$0xff] %vm2299_vm12, %v2288_v33  ;;  %2304 = vst.msk [vmem:[#allocation3 + $0x28] sm:$0xff] %vm2299_vm12, %v2290_v25 }
 0x1b5 PF: > { %p3715_p11 = scmp.ne.s32.totalorder %s4312_s21, 3 }
 0x1b6   : > { %v4333_v37 = vmov (!%p3715_p11), 0  }
 0x1b7   : > { %2315 = sbr.rel (%p3715_p11) target bundleno = 446 (0x1be), region = 84  ;;  %2316 = vst.msk [vmem:[#allocation3 + $0x28] sm:$0xf0] (!%p3715_p11), %vm2272_vm7, %v4333_v37 }
 0x1b8   : > { %2317 = vst.msk [vmem:[#allocation3 + $0x30] sm:$0xf] (!%p3715_p11), %vm2270_vm8, %v4333_v37 }
 0x1be PF: > { %v3716_v54 = vld [vmem:[%s5341_s8 + $0xc] sm:$0xf]  ;;  %v5052_v29 = vld [vmem:[#allocation3 + $0x10] sm:$0xff]  ;;  %v2324_v47 = vld [vmem:[#allocation3 + $0x8] sm:$0xf8] }
 0x1bf   : > { %4236 = vmatprep.subr.msk.bf16.mxu1 %vm580_vm3, %v3716_v54  ;;  %v2387_v20 = vsel %vm580_vm3, %v3716_v54, 0  ;;  %v2330_v57 = vshrl.u32 %v2324_v47, 16  ;;  %v2333_v27 = vshll.u32 %v2324_v47, 16  ;;  %v2338_v1 = vshrl.u32 %v5052_v29, 16  ;;  %v2323_v2 = vld [vmem:[%s5341_s8] sm:$0xf] }
 0x1c0   : > { %4008 = vmatpush3.bf16.msra.mxu1 %v2387_v20  ;;  %v2341_v48 = vshll.u32 %v5052_v29, 16  ;;  %v5061_v44 = vld [vmem:[#allocation3 + $0x18] sm:$0xff]  ;;  %v5063_v23 = vld [vmem:[#allocation3 + $0x20] sm:$0xff]  ;;  %v5065_v51 = vld [vmem:[#allocation3 + $0x28] sm:$0xf]  ;;  %v2491_v56 = vsel %vm580_vm3, %v2323_v2, 0 }
 0x1c1   : > { %v2332_v7 = vrot.slane %v2330_v57, 3  ;;  %v2335_v32 = vrot.slane %v2333_v27, 4  ;;  %v2340_v49 = vrot.slane %v2338_v1, 3  ;;  %4237 = vmatprep.subr.msk.bf16.mxu1 %vm580_vm3, %v2323_v2  ;;  %v2347_v62 = vshrl.u32 %v5061_v44, 16  ;;  %v2318_v34 = vld [vmem:[#allocation3] sm:$0xf8] }
 0x1c2   : > { %v2343_v45 = vrot.slane %v2341_v48, 4  ;;  %v2350_v59 = vshll.u32 %v5061_v44, 16  ;;  %v2356_v21 = vshrl.u32 %v5063_v23, 16  ;;  %v2359_v31 = vshll.u32 %v5063_v23, 16  ;;  %v5074_v52 = vld [vmem:[#allocation3 + $0x8] sm:$0xff] }
 0x1c3   : > { %v2336_v0 = vor.u32 %v2335_v32, %v2332_v7  ;;  %v2349_v39 = vrot.slane %v2347_v62, 3  ;;  %v2365_v42 = vshrl.u32 %v5065_v51, 16  ;;  %v2368_v22 = vshll.u32 %v5065_v51, 16  ;;  %v3746_v55 = vld [vmem:[%s5341_s8 + $0x14] sm:$0xf] }
 0x1c4   : > { %v5076_v41 = vor.u32 %v2343_v45, %v2340_v49  ;;  %v2352_v58 = vrot.slane %v2350_v59, 4  ;;  %v2358_v18 = vrot.slane %v2356_v21, 3  ;;  %v2361_v24 = vrot.slane %v2359_v31, 4  ;;  %4242 = vmatprep.subr.msk.bf16.mxu0 %vm580_vm3, %v3746_v55  ;;  %v5092_v38 = vld [vmem:[#allocation3 + $0x8] sm:$0xf0] }
 0x1c5   : > { %v2367_v36 = vrot.slane %v2365_v42, 3  ;;  %v2370_v53 = vrot.slane %v2368_v22, 4  ;;  %v2455_v35 = vshrl.u32 %v2318_v34, 16  ;;  %v2458_v17 = vshll.u32 %v2318_v34, 16  ;;  %v3725_v37 = vld [vmem:[%s5341_s8 + $0x18] sm:$0xf] }
 0x1c6   : > { %v2345_v61 = vsel %vm913_vm5, %v2336_v0, %v5076_v41  ;;  %v5084_v12 = vor.u32 %v2352_v58, %v2349_v39  ;;  %v5086_v26 = vor.u32 %v2361_v24, %v2358_v18  ;;  %v2463_v63 = vshrl.u32 %v5074_v52, 16  ;;  %v3745_v47 = vld [vmem:[%s5341_s8 + $0x8] sm:$0xf] }
 0x1c7   : > { %4009 = vmatprep.mubr.msk.bf16.mxu1 %vm2299_vm12, %v2345_v61  ;;  %v2457_v60 = vrot.slane %v2455_v35, 3  ;;  %v2460_v6 = vrot.slane %v2458_v17, 4  ;;  %v2466_v14 = vshll.u32 %v5074_v52, 16  ;;  %v2371_v20 = vor.u32 %v2370_v53, %v2367_v36  ;;  %v5123_v42 = vld [vmem:[#allocation3 + $0x20] sm:$0xf] }
 0x1c8   : > { %v5097_v33 = vsel %vm913_vm5, %v5076_v41, %v5084_v12  ;;  %v5102_v25 = vsel %vm913_vm5, %v5084_v12, %v5086_v26  ;;  %v2465_v50 = vrot.slane %v2463_v63, 3  ;;  %v3052_v57 = vsel %vm580_vm3, %v3746_v55, 0  ;;  %v3007_v55 = vld [vmem:[#allocation3 + $0x28] sm:$0x1f] }
 0x1c9   : > { %4010 = vmatmul.mubr.msk.bf16.vlgmr.msra.gmra.mrb[12].mxu1 %vm2299_vm12, %v5097_v33  ;;  %v2468_v54 = vrot.slane %v2466_v14, 4  ;;  %v3011_v27 = vshrl.u32 %v5092_v38, 16  ;;  %v3014_v2 = vshll.u32 %v5092_v38, 16  ;;  %v2461_v7 = vor.u32 %v2460_v6, %v2457_v60  ;;  %4068 = vmatpush3.bf16.msra.mxu0 %v3052_v57 }
 0x1ca   : > { %4018 = vmatpush3.bf16.msra.mxu1 %v2491_v56  ;;  %4013 = vmatprep.mubr.msk.bf16.mxu1 %vm2299_vm12, %v5102_v25  ;;  %v3018_v49 = vrot.slane %v2338_v1, 4  ;;  %v3019_v45 = vrot.slane %v2341_v48, 5  ;;  %v3022_v39 = vrot.slane %v2347_v62, 4  ;;  %v3023_v58 = vrot.slane %v2350_v59, 5  ;;  %v2558_v1 = vld [vmem:[#allocation3 + $0x10] sm:$0xf8] }
 0x1cb   : > { %v2469_v32 = vor.u32 %v2468_v54, %v2465_v50  ;;  %4238 = vmatprep.subr.msk.bf16.mxu1 %vm580_vm3, %v3725_v37  ;;  %v3013_v34 = vrot.slane %v3011_v27, 4  ;;  %v3016_v0 = vrot.slane %v3014_v2, 5  ;;  %4243 = vmatprep.subr.msk.bf16.mxu0 %vm580_vm3, %v3745_v47  ;;  %v2372_v18 = vsel %vm913_vm5, %v5086_v26, %v2371_v20  ;;  %v5152_v54 = vld [vmem:[#allocation3] sm:$0xf0] }
 0x1cc   : > { %v5125_v22 = vor.u32 %v3019_v45, %v3018_v49  ;;  %v5130_v53 = vor.u32 %v3023_v58, %v3022_v39  ;;  %v3026_v48 = vrot.slane %v2356_v21, 4  ;;  %v3027_v35 = vrot.slane %v2359_v31, 5  ;;  %v3755_v21 = vld [vmem:[%s5341_s8 + $0x20] sm:$0xf] }
 0x1cd   : > { %v3017_v24 = vor.u32 %v3016_v0, %v3013_v34  ;;  %v2470_v36 = vsel %vm913_vm5, %v2461_v7, %v2469_v32  ;;  %v2473_v62 = vshrl.u32 %v5123_v42, 16  ;;  %v3031_v56 = vshrl.u32 %v3007_v55, 16 }
 0x1ce   : > { %v5140_v59 = vsel %vm1781_vm6, %v5125_v22, %v5130_v53  ;;  %v5142_v61 = vor.u32 %v3027_v35, %v3026_v48  ;;  %v3034_v60 = vshll.u32 %v3007_v55, 16  ;;  %v2476_v31 = vshll.u32 %v5123_v42, 16  ;;  %v5176_v35 = vld [vmem:[#allocation3 + $0x28] sm:$0xff] }
 0x1cf   : > { %v3021_v17 = vsel %vm1781_vm6, %v3017_v24, %v5125_v22  ;;  %v2566_v6 = vshrl.u32 %v2558_v1, 16  ;;  %v3151_v50 = vsel %vm580_vm3, %v3745_v47, 0  ;;  %v2569_v20 = vshll.u32 %v2558_v1, 16  ;;  %v3731_v1 = vld [vmem:[%s5341_s8 + $0x10] sm:$0xf] }
 0x1d0   : > { %4069 = vmatprep.mubr.msk.bf16.mxu0 %vm2299_vm12, %v3021_v17  ;;  %v5157_v57 = vsel %vm1781_vm6, %v5130_v53, %v5142_v61  ;;  %v3033_v27 = vrot.slane %v3031_v56, 4  ;;  %v3036_v2 = vrot.slane %v3034_v60, 5  ;;  %v2622_v7 = vsel %vm580_vm3, %v3725_v37, 0 }
 0x1d1   : > { %4014 = vmatmul.mubr.msk.bf16.gmra.mrb[16].mxu1 %vm2299_vm12, %v2372_v18  ;;  %4070 = vmatmul.mubr.msk.bf16.vlgmr.msra.gmra.mrb[24].mxu0 %vm2299_vm12, %v5140_v59  ;;  %v2475_v49 = vrot.slane %v2473_v62, 3  ;;  %v3120_v45 = vshrl.u32 %v5152_v54, 16  ;;  %v3123_v34 = vshll.u32 %v5152_v54, 16  ;;  %v2471_v0 = vsel %vm913_vm5, %v2469_v32, %v5076_v41  ;;  %v3004_v32 = vld [vmem:[#allocation3 + $0x20] sm:$0x1f] }
 0x1d2   : > { %4019 = vmatprep.mubr.msk.bf16.mxu1 %vm2299_vm12, %v2470_v36  ;;  %4078 = vmatpush3.bf16.msra.mxu0 %v3151_v50  ;;  %v3037_v47 = vor.u32 %v3036_v2, %v3033_v27  ;;  %v2478_v39 = vrot.slane %v2476_v31, 4  ;;  %v3127_v58 = vrot.slane %v2463_v63, 4  ;;  %v3128_v37 = vrot.slane %v2466_v14, 5  ;;  %v5181_v62 = vld [vmem:[#allocation3 + $0x10] sm:$0xf0] }
 0x1d3   : > { %4073 = vmatprep.mubr.msk.bf16.mxu0 %vm2299_vm12, %v5157_v57  ;;  %4244 = vmatprep.subr.msk.bf16.mxu0 %vm580_vm3, %v3755_v21  ;;  %v2568_v18 = vrot.slane %v2566_v6, 3  ;;  %v2571_v24 = vrot.slane %v2569_v20, 4  ;;  %v3122_v55 = vrot.slane %v3120_v45, 4  ;;  %v3125_v36 = vrot.slane %v3123_v34, 5 }
 0x1d4   : > { %v3038_v48 = vsel %vm1781_vm6, %v5142_v61, %v3037_v47  ;;  %v3129_v41 = vor.u32 %v3128_v37, %v3127_v58  ;;  %v2479_v14 = vor.u32 %v2478_v39, %v2475_v49  ;;  %v2592_v56 = vshrl.u32 %v5176_v35, 16  ;;  %v5195_v47 = vld [vmem:[#allocation3 + $0x30] sm:$0xf] }
 0x1d5   : > { %v3126_v63 = vor.u32 %v3125_v36, %v3122_v55  ;;  %v2572_v17 = vor.u32 %v2571_v24, %v2568_v18  ;;  %v2595_v60 = vshll.u32 %v5176_v35, 16  ;;  %v3133_v6 = vshrl.u32 %v3004_v32, 16 }
 0x1d6   : > { %v3136_v50 = vshll.u32 %v3004_v32, 16  ;;  %v3225_v20 = vshll.u32 %v5181_v62, 16  ;;  %v2480_v27 = vsel %vm913_vm5, %v5084_v12, %v2479_v14  ;;  %v3131_v45 = vsel %vm1781_vm6, %v3129_v41, %v5125_v22 }
 0x1d7   : > { %v3130_v31 = vsel %vm1781_vm6, %v3126_v63, %v3129_v41  ;;  %v2581_v2 = vsel %vm913_vm5, %v2572_v17, %v5084_v12  ;;  %v2597_v49 = vrot.slane %v2595_v60, 4  ;;  %v3135_v34 = vrot.slane %v3133_v6, 4  ;;  %v3730_v63 = vld [vmem:[%s5341_s8 + $0x4] sm:$0xf] }
 0x1d8   : > { %v3263_v39 = vsel %vm580_vm3, %v3755_v21, 0  ;;  %v3227_v37 = vrot.slane %v3225_v20, 5  ;;  %v2601_v18 = vshrl.u32 %v5195_v47, 16  ;;  %v2604_v12 = vshll.u32 %v5195_v47, 16 }
 0x1d9   : > { %4020 = vmatmul.mubr.msk.bf16.vlgmr.msra.gmra.mrb[12].mxu1 %vm2299_vm12, %v2471_v0  ;;  %4074 = vmatmul.mubr.msk.bf16.gmra.mrb[28].mxu0 %vm2299_vm12, %v3038_v48  ;;  %v3138_v0 = vrot.slane %v3136_v50, 5  ;;  %v2738_v21 = vsel %vm580_vm3, %v3731_v1, 0  ;;  %v3237_v14 = vrot.slane %v2592_v56, 4  ;;  %v3238_v17 = vrot.slane %v2595_v60, 5 }
 0x1da   : > { %4028 = vmatpush3.bf16.msra.mxu1 %v2622_v7  ;;  %4023 = vmatprep.mubr.msk.bf16.mxu1 %vm2299_vm12, %v5097_v33  ;;  %v3222_v33 = vshrl.u32 %v5181_v62, 16  ;;  %v2594_v7 = vrot.slane %v2592_v56, 3  ;;  %v2603_v36 = vrot.slane %v2601_v18, 3  ;;  %v2606_v48 = vrot.slane %v2604_v12, 4 }
 0x1db   : > { %4239 = vmatprep.subr.msk.bf16.mxu1 %vm580_vm3, %v3731_v1  ;;  %4079 = vmatprep.mubr.msk.bf16.mxu0 %vm2299_vm12, %v3130_v31  ;;  %v3139_v22 = vor.u32 %v3138_v0, %v3135_v34  ;;  %v3218_v31 = vld [vmem:[#allocation3 + $0x30] sm:$0x1f]  ;;  %v2716_v1 = vrot.slane %v5092_v38, 4  ;;  %v2717_v6 = vrot.slane %v5052_v29, 4  ;;  %v2719_v38 = vrot.slane %v5061_v44, 4 }
 0x1dc   : > { %v3224_v58 = vrot.slane %v3222_v33, 4  ;;  %v2598_v24 = vor.u32 %v2597_v49, %v2594_v7  ;;  %v3245_v50 = vshll.u32 %v3218_v31, 16  ;;  %v2824_v49 = vsel %vm580_vm3, %v3730_v63, 0 }
 0x1dd   : > { %v3140_v32 = vsel %vm1781_vm6, %v5130_v53, %v3139_v22  ;;  %v2718_v60 = vsel %vm580_vm3, %v2716_v1, %v2717_v6  ;;  %v2720_v7 = vsel %vm580_vm3, %v2717_v6, %v2719_v38  ;;  %v2809_v34 = vrot.slane %v5074_v52, 4  ;;  %v3358_v52 = vld [vmem:[%s5342_s9] sm:$0x3] }
 0x1de   : > { %v3228_v55 = vor.u32 %v3227_v37, %v3224_v58  ;;  %v2599_v41 = vsel %vm913_vm5, %v5086_v26, %v2598_v24  ;;  %v2607_v26 = vor.u32 %v2606_v48, %v2603_v36  ;;  %v3247_v20 = vrot.slane %v3245_v50, 5 }
 0x1df   : > { %v2811_v58 = vsel %vm580_vm3, %v2809_v34, %v2717_v6  ;;  %v2899_v37 = vrot.slane %v5181_v62, 4  ;;  %v3372_v22 = vsel %vm994_vm4, %v3358_v52, 0  ;;  %v3354_v36 = vpack.c.bf16 %v4474_v4, %v4472_v3 }
 0x1e0   : > { %v2608_v56 = vsel %vm913_vm5, %v2598_v24, %v2607_v26  ;;  %v2904_v24 = vrot.slane %v5176_v35, 4  ;;  %v3355_v35 = vpack.c.bf16 %v4482_v8, %v4476_v5  ;;  %v3356_v48 = vpack.c.bf16 %v4488_v11, %v4486_v10 }
 0x1e1   : > { %4024 = vmatmul.mubr.msk.bf16.gmra.mrb[16].mxu1 %vm2299_vm12, %v2480_v27  ;;  %4080 = vmatmul.mubr.msk.bf16.vlgmr.msra.gmra.mrb[24].mxu0 %vm2299_vm12, %v3131_v45  ;;  %v2721_v27 = vrot.slane %v5063_v23, 4  ;;  %v2723_v23 = vrot.slane %v5065_v51, 4  ;;  %v2901_v12 = vsel %vm580_vm3, %v2899_v37, %v2719_v38 }
 0x1e2   : > { %4029 = vmatprep.mubr.msk.bf16.mxu1 %vm2299_vm12, %v2581_v2  ;;  %4083 = vmatprep.mubr.msk.bf16.mxu0 %vm2299_vm12, %v5140_v59  ;;  %v3232_v59 = vsel %vm1781_vm6, %v3228_v55, %v5130_v53  ;;  %v3239_v53 = vor.u32 %v3238_v17, %v3237_v14 }
 0x1e3   : > { %4088 = vmatpush3.bf16.msra.mxu0 %v3263_v39  ;;  %v2722_v45 = vsel %vm580_vm3, %v2719_v38, %v2721_v27  ;;  %v2724_v0 = vsel %vm580_vm3, %v2721_v27, %v2723_v23  ;;  %v2905_v55 = vsel %vm580_vm3, %v2721_v27, %v2904_v24 }
 0x1e4   : > { %v3240_v29 = vsel %vm1781_vm6, %v5142_v61, %v3239_v53  ;;  %v3740_v61 = vld [vmem:[%s5341_s8 + $0x1c] sm:$0xf] }
 0x1e5   : > { %v2921_v51 = vsel %vm580_vm3, %v3740_v61, 0 }
 0x1e9   : > { %4030 = vmatmul.mubr.msk.bf16.vlgmr.msra.gmra.mrb[12].mxu1 %vm2299_vm12, %v5102_v25  ;;  %4084 = vmatmul.mubr.msk.bf16.gmra.mrb[28].mxu0 %vm2299_vm12, %v3140_v32  ;;  %v3242_v25 = vshrl.u32 %v3218_v31, 16 }
 0x1ea   : > { %4038 = vmatpush3.bf16.msra.mxu1 %v2738_v21  ;;  %4033 = vmatprep.mubr.msk.bf16.mxu1 %vm2299_vm12, %v2599_v41 }
 0x1eb   : > { %4240 = vmatprep.subr.msk.bf16.mxu1 %vm580_vm3, %v3730_v63  ;;  %4089 = vmatprep.mubr.msk.bf16.mxu0 %vm2299_vm12, %v3232_v59  ;;  %v3244_v33 = vrot.slane %v3242_v25, 4 }
 0x1ed   : > { %v3248_v2 = vor.u32 %v3247_v20, %v3244_v33 }
 0x1ef   : > { %v3249_v44 = vsel %vm1781_vm6, %v3239_v53, %v3248_v2 }
 0x1f1   : > { %4034 = vmatmul.mubr.msk.bf16.gmra.mrb[16].mxu1 %vm2299_vm12, %v2608_v56  ;;  %4090 = vmatmul.mubr.msk.bf16.vlgmr.msra.gmra.mrb[24].mxu0 %vm2299_vm12, %v5157_v57  ;;  %v2808_v57 = vrot.slane %v5152_v54, 4  ;;  %v2812_v54 = vrot.slane %v5123_v42, 4  ;;  %v2906_v42 = vrot.slane %v5195_v47, 4  ;;  %v3357_v47 = vpack.c.bf16 %v4498_v16, %v4496_v15 }
 0x1f2   : > { %4039 = vmatprep.mubr.msk.bf16.mxu1 %vm2299_vm12, %v2718_v60  ;;  %4093 = vmatprep.mubr.msk.bf16.mxu0 %vm2299_vm12, %v3240_v29 }
 0x1f3   : > { %v2810_v39 = vsel %vm580_vm3, %v2808_v57, %v2809_v34  ;;  %v2813_v18 = vsel %vm580_vm3, %v2719_v38, %v2812_v54  ;;  %v2907_v62 = vsel %vm580_vm3, %v2904_v24, %v2906_v42 }
 0x1f9   : > { %4040 = vmatmul.mubr.msk.bf16.vlgmr.msra.gmra.mrb[20].mxu1 %vm2299_vm12, %v2720_v7  ;;  %4094 = vmatmul.mubr.msk.bf16.gmra.mrb[28].mxu0 %vm2299_vm12, %v3249_v44 }
 0x1fa   : > { %4048 = vmatpush3.bf16.msra.mxu1 %v2824_v49  ;;  %4043 = vmatprep.mubr.msk.bf16.mxu1 %vm2299_vm12, %v2722_v45 }
 0x1fb   : > { %4241 = vmatprep.subr.msk.bf16.mxu1 %vm580_vm3, %v3740_v61 }
 0x201   : > { %4044 = vmatmul.mubr.msk.bf16.gmra.mrb[24].mxu1 %vm2299_vm12, %v2724_v0 }
 0x202   : > { %4049 = vmatprep.mubr.msk.bf16.mxu1 %vm2299_vm12, %v2810_v39 }
 0x209   : > { %4050 = vmatmul.mubr.msk.bf16.vlgmr.msra.gmra.mrb[20].mxu1 %vm2299_vm12, %v2811_v58 }
 0x20a   : > { %4058 = vmatpush3.bf16.msra.mxu1 %v2921_v51  ;;  %4053 = vmatprep.mubr.msk.bf16.mxu1 %vm2299_vm12, %v2720_v7 }
 0x20b   : > { %4245 = vmatprep.subr.msk.bf16.mxu1 %vm994_vm4, %v3358_v52 }
 0x211   : > { %4054 = vmatmul.mubr.msk.bf16.gmra.mrb[24].mxu1 %vm2299_vm12, %v2813_v18 }
 0x212   : > { %4059 = vmatprep.mubr.msk.bf16.mxu1 %vm2299_vm12, %v2901_v12 }
 0x219   : > { %4060 = vmatmul.mubr.msk.bf16.vlgmr.msra.gmra.mrb[20].mxu1 %vm2299_vm12, %v2722_v45 }
 0x21a   : > { %4098 = vmatpush3.bf16.msra.mxu1 %v3372_v22  ;;  %4063 = vmatprep.mubr.msk.bf16.mxu1 %vm2299_vm12, %v2905_v55 }
 0x221   : > { %4064 = vmatmul.mubr.msk.bf16.gmra.mrb[24].mxu1 %vm2299_vm12, %v2907_v62 }
 0x222   : > { %4099 = vmatprep.mubr.msk.bf16.mxu1 %vm594_vm2, %v3354_v36 }
 0x229   : > { %4100 = vmatmul.mubr.msk.bf16.vlgmr.msra.gmra.mrb[28].mxu1 %vm594_vm2, %v3355_v35 }
 0x22a   : > { %4103 = vmatprep.mubr.msk.bf16.mxu1 %vm594_vm2, %v3356_v48 }
 0x231   : > { %4104 = vmatmul.mubr.msk.bf16.gmra.mrb[32].mxu1 %vm594_vm2, %v3357_v47 }
 0x2bc   : > { %v4031_v3 = vpop.f32.mrb[12].mxu1 }
 0x2bd   : > { %v2658_v4 = vpop.f32.mrb[13].mxu1  ;;  %v2699_v15 = vmul.f32 %v4031_v3, %v4930_v46 }
 0x2be   : > { %v4032_v21 = vpop.f32.mrb[14].mxu1  ;;  %v2697_v16 = vmul.f32 %v4933_v13, %v2658_v4 }
 0x2bf   : > { %v2661_v41 = vpop.f32.mrb[15].mxu1 }
 0x2c4   : > { %v4035_v63 = vpop.f32.mrb[16].mxu1  ;;  %v4091_v5 = vpop.f32.mrb[24].mxu0 }
 0x2c5   : > { %v2674_v32 = vpop.f32.mrb[17].mxu1  ;;  %v3299_v14 = vpop.f32.mrb[25].mxu0  ;;  %v2703_v46 = vmul.f32 %v4035_v63, %v4944_v9  ;;  %v3764_v9 = vld [vmem:[%s5343_s10] ss:$0 sm:$0xff] }
 0x2c6   : > { %v4036_v59 = vpop.f32.mrb[18].mxu1  ;;  %v4092_v10 = vpop.f32.mrb[26].mxu0  ;;  %v2701_v13 = vmul.f32 %v4947_v28, %v2674_v32 }
 0x2c7   : > { %v2677_v8 = vpop.f32.mrb[19].mxu1  ;;  %v3302_v11 = vpop.f32.mrb[27].mxu0  ;;  %v3341_v60 = vmul.f32 %v4092_v10, %v4975_v40 }
 0x2c8   : > { %v3339_v38 = vmul.f32 %v4978_v30, %v3302_v11 }
 0x2cc   : > { %v4095_v17 = vpop.f32.mrb[28].mxu0 }
 0x2cd   : > { %v3315_v31 = vpop.f32.mrb[29].mxu0 }
 0x2ce   : > { %v4096_v26 = vpop.f32.mrb[30].mxu0 }
 0x2cf   : > { %v3318_v1 = vpop.f32.mrb[31].mxu0  ;;  %v3345_v40 = vmul.f32 %v4096_v26, %v4998_v43  ;;  %v3765_v43 = vld [vmem:[%s5344_s11] ss:$0 sm:$0xff] }
 0x2d0   : > { %v3343_v30 = vmul.f32 %v5002_v19, %v3318_v1 }
 0x2ec   : > { %v4061_v6 = vpop.f32.mrb[20].mxu1 }
 0x2ed   : > { %v2998_v25 = vadd.f32 %v4061_v6, %v2699_v15  ;;  %v2957_v50 = vpop.f32.mrb[21].mxu1 }
 0x2ee   : > { %v2996_v53 = vadd.f32 %v2957_v50, %v2697_v16  ;;  %v4062_v56 = vpop.f32.mrb[22].mxu1 }
 0x2ef   : > { %v3348_v33 = vadd.f32 %v4091_v5, %v2998_v25  ;;  %v2999_v20 = vadd.f32 %v4062_v56, %v4032_v21  ;;  %v2960_v29 = vpop.f32.mrb[23].mxu1 }
 0x2f0   : > { %v3346_v27 = vadd.f32 %v3299_v14, %v2996_v53  ;;  %v2997_v2 = vadd.f32 %v2960_v29, %v2661_v41 }
 0x2f1   : > { %v3349_v7 = vadd.f32 %v3341_v60, %v2999_v20 }
 0x2f2   : > { %v3347_v49 = vadd.f32 %v3339_v38, %v2997_v2 }
 0x2f4   : > { %v4065_v45 = vpop.f32.mrb[24].mxu1 }
 0x2f5   : > { %v3002_v61 = vadd.f32 %v4065_v45, %v2703_v46  ;;  %v2973_v44 = vpop.f32.mrb[25].mxu1 }
 0x2f6   : > { %v3000_v23 = vadd.f32 %v2973_v44, %v2701_v13  ;;  %v4066_v57 = vpop.f32.mrb[26].mxu1 }
 0x2f7   : > { %v3352_v34 = vadd.f32 %v4095_v17, %v3002_v61  ;;  %v3003_v0 = vadd.f32 %v4066_v57, %v4036_v59  ;;  %v2976_v39 = vpop.f32.mrb[27].mxu1 }
 0x2f8   : > { %v3350_v58 = vadd.f32 %v3315_v31, %v3000_v23  ;;  %v3001_v51 = vadd.f32 %v2976_v39, %v2677_v8 }
 0x2f9   : > { %v3353_v52 = vadd.f32 %v3345_v40, %v3003_v0 }
 0x2fa   : > { %v3351_v54 = vadd.f32 %v3343_v30, %v3001_v51 }
 0x2fc   : > { %v4101_v28 = vpop.f32.mrb[28].mxu1 }
 0x2fd   : > { %v3448_v37 = vmul.f32 %v4101_v28, %v3764_v9  ;;  %v3408_v18 = vpop.f32.mrb[29].mxu1 }
 0x2fe   : > { %v3446_v12 = vmul.f32 %v3764_v9, %v3408_v18  ;;  %v4102_v19 = vpop.f32.mrb[30].mxu1 }
 0x2ff   : > { %v3456_v24 = vadd.f32 %v3448_v37, %v3348_v33  ;;  %v3449_v22 = vmul.f32 %v4102_v19, %v3764_v9  ;;  %v3411_v55 = vpop.f32.mrb[31].mxu1 }
 0x300   : > { %v3454_v42 = vadd.f32 %v3446_v12, %v3346_v27  ;;  %v3447_v62 = vmul.f32 %v3764_v9, %v3411_v55 }
 0x301   : > { %v3471_v36 = vadd.f32 %v3765_v43, %v3456_v24  ;;  %v3457_v35 = vadd.f32 %v3449_v22, %v3349_v7 }
 0x302   : > { %v3469_v48 = vadd.f32 %v3765_v43, %v3454_v42  ;;  %v3455_v47 = vadd.f32 %v3447_v62, %v3347_v49 }
 0x303   : > { %3479 = vst.msk [vmem:[%s4464_s26 + $0x10] sm:$0xff] %vm2299_vm12, %v3471_v36  ;;  %v3472_v3 = vadd.f32 %v3765_v43, %v3457_v35 }
 0x304   : > { %3477 = vst.msk [vmem:[%s4464_s26] sm:$0xff] %vm2299_vm12, %v3469_v48  ;;  %v3470_v4 = vadd.f32 %v3765_v43, %v3455_v47  ;;  %v4105_v21 = vpop.f32.mrb[32].mxu1 }
 0x305   : > { %3480 = vst.msk [vmem:[%s4464_s26 + $0x18] sm:$0xff] %vm2299_vm12, %v3472_v3  ;;  %v3452_v41 = vmul.f32 %v4105_v21, %v3764_v9  ;;  %v3424_v63 = vpop.f32.mrb[33].mxu1 }
 0x306   : > { %3478 = vst.msk [vmem:[%s4464_s26 + $0x8] sm:$0xff] %vm2299_vm12, %v3470_v4  ;;  %v3450_v32 = vmul.f32 %v3764_v9, %v3424_v63  ;;  %v4106_v59 = vpop.f32.mrb[34].mxu1 }
 0x307   : > { %v3460_v5 = vadd.f32 %v3452_v41, %v3352_v34  ;;  %v3453_v8 = vmul.f32 %v4106_v59, %v3764_v9  ;;  %v3427_v14 = vpop.f32.mrb[35].mxu1 }
 0x308   : > { %v3458_v10 = vadd.f32 %v3450_v32, %v3350_v58  ;;  %v3451_v11 = vmul.f32 %v3764_v9, %v3427_v14 }
 0x309   : > { %v3475_v17 = vadd.f32 %v3765_v43, %v3460_v5  ;;  %v3461_v31 = vadd.f32 %v3453_v8, %v3353_v52 }
 0x30a   : > { %v3473_v26 = vadd.f32 %v3765_v43, %v3458_v10  ;;  %v3459_v1 = vadd.f32 %v3451_v11, %v3351_v54 }
 0x30b   : > { %3483 = vst.msk [vmem:[%s4464_s26 + $0x30] sm:$0xff] %vm2299_vm12, %v3475_v17  ;;  %v3476_v15 = vadd.f32 %v3765_v43, %v3461_v31 }
 0x30c   : > { %3481 = vst.msk [vmem:[%s4464_s26 + $0x20] sm:$0xff] %vm2299_vm12, %v3473_v26  ;;  %v3474_v16 = vadd.f32 %v3765_v43, %v3459_v1 }
 0x30d   : > { %3484 = vst.msk [vmem:[%s4464_s26 + $0x38] sm:$0xff] %vm2299_vm12, %v3476_v15 }
 0x30e   : > { %3482 = vst.msk [vmem:[%s4464_s26 + $0x28] sm:$0xff] %vm2299_vm12, %v3474_v16 }
 0x30f PF: > { %s22_s25 = sadd.s32 1, %s4328_s25   ;;  %s5357_s21 = sld [smem:[#allocation4_spill]] }
 0x310   : > { %p19_p12 = scmp.ge.s32.totalorder %s22_s25, 10   ;;  %s5358_s22 = sld [smem:[#allocation5_spill]] }
 0x311   : > { %s5359_s23 = sld [smem:[#allocation6_spill]]  ;;  %s5360_s24 = sld [smem:[#allocation7_spill]] }
 0x312   :  { %21 = sbr.rel (!%p19_p12) target bundleno = 3 (0x3), region = 136 }

</bundles_post_ra>
